<compile_context>
chip_gen: v6e
topology: v6e:2x2x1
jax: 0.10.0
libtpu: 0.0.40
codegen_flags: <defaults>
</compile_context>

<pallas_src>
import math

import numpy as np
import jax
import jax.numpy as jnp
from jax.experimental import pallas as pl
from jax.experimental.pallas import tpu as pltpu

# --- kaldifeat / Kaldi Fbank default configuration (icefall pipeline) -------
SAMPLE_RATE = 16000
FRAME_LENGTH = 400        # 25 ms
FRAME_SHIFT = 160         # 10 ms
N_FFT = 512               # round_to_power_of_two
N_MELS = 80
PREEMPH = 0.97
LOW_FREQ = 20.0
HIGH_FREQ = 7600.0        # nyquist + (-400)
LOG_EPS = 1.1920928955078125e-07   # float32 epsilon (Kaldi energy floor)

PAD_LEN = 512             # frame rows zero-padded to N_FFT (lane aligned)
K_PAD = 256               # rfft bins 0..255 (Nyquist bin unused by mel banks)
MEL_PAD = 128             # mel output padded to full lane width (80 -> 128)
MAX_TN = 512              # frames per grid step (fills MXU M; ~1 MiB f32 tile)


def _cdiv(a, b):
    return (a + b - 1) // b


def _round_up(x, m):
    return _cdiv(x, m) * m


# ------------------------------- Pallas kernel ------------------------------
def fbank_kernel(frames_ref, dft_hi_ref, dft_lo_ref, mel_hi_ref, mel_lo_ref,
                 out_ref):
    x = frames_ref[...]                                   # (TN, 512) f32
    # bf16 hi/lo split of the frame tile -> 3 explicit native-rate MXU passes
    # against the (composed) DFT matrix; f32-accumulated (~f32 accuracy).
    x_hi = x.astype(jnp.bfloat16)
    x_lo = (x - x_hi.astype(jnp.float32)).astype(jnp.bfloat16)
    dft_hi = dft_hi_ref[...]
    dft_lo = dft_lo_ref[...]
    spec = (jnp.dot(x_hi, dft_hi, preferred_element_type=jnp.float32)
            + jnp.dot(x_lo, dft_hi, preferred_element_type=jnp.float32)
            + jnp.dot(x_hi, dft_lo, preferred_element_type=jnp.float32))
    re = spec[:, :K_PAD]                                  # lane-aligned slices
    im = spec[:, K_PAD:]
    power = re * re + im * im                             # (TN, 256) f32
    # mel filterbank (padded to 128 cols), same 3-pass bf16 split, then log.
    p_hi = power.astype(jnp.bfloat16)
    p_lo = (power - p_hi.astype(jnp.float32)).astype(jnp.bfloat16)
    mel_hi = mel_hi_ref[...]
    mel_lo = mel_lo_ref[...]
    mel = (jnp.dot(p_hi, mel_hi, preferred_element_type=jnp.float32)
           + jnp.dot(p_lo, mel_hi, preferred_element_type=jnp.float32)
           + jnp.dot(p_hi, mel_lo, preferred_element_type=jnp.float32))
    out_ref[...] = jnp.log(jnp.maximum(mel, LOG_EPS))


# ------------------------------ parameter setup ------------------------------
def _composed_dft_matrix():
    """(512, 512) float64 matrix M so that  frame_row @ M = [Re | Im] (256 bins
    each) of the DC-removed, pre-emphasized, povey-windowed frame.
    Rows >= FRAME_LENGTH are exactly zero (columns 400..511 of the frame tile
    may hold arbitrary finite values)."""
    fl = FRAME_LENGTH
    n = np.arange(fl, dtype=np.float64)
    win = (0.5 - 0.5 * np.cos(2.0 * np.pi * n / (fl - 1))) ** 0.85
    dc = np.eye(fl) - np.full((fl, fl), 1.0 / fl)          # remove_dc_offset
    pre = np.eye(fl)                                        # pre-emphasis
    pre[np.arange(1, fl), np.arange(fl - 1)] = -PREEMPH
    pre[0, 0] = 1.0 - PREEMPH                               # x[0] -= 0.97*x[0]
    ang = (2.0 * np.pi / N_FFT) * n[:, None] * np.arange(K_PAD,
                                                         dtype=np.float64)[None, :]
    f_nk = np.concatenate([np.cos(ang), -np.sin(ang)], axis=1)   # (400, 512)
    m = (f_nk.T @ (win[:, None] * (pre @ dc))).T                 # (400, 512)
    return np.concatenate([m, np.zeros((PAD_LEN - fl, 2 * K_PAD))], axis=0)


def _kaldi_mel_banks():
    """Kaldi mel filterbank, transposed + zero-padded to (K_PAD, MEL_PAD), f64."""
    fft_bin_width = SAMPLE_RATE / N_FFT

    def hz_to_mel(f):
        return 1127.0 * np.log(1.0 + f / 700.0)

    mel_low, mel_high = hz_to_mel(LOW_FREQ), hz_to_mel(HIGH_FREQ)
    mel_delta = (mel_high - mel_low) / (N_MELS + 1)
    b = np.arange(N_MELS, dtype=np.float64)[:, None]
    left = mel_low + b * mel_delta
    center = left + mel_delta
    right = center + mel_delta
    m = hz_to_mel(fft_bin_width * np.arange(K_PAD, dtype=np.float64)[None, :])
    w = np.maximum(0.0, np.minimum((m - left) / (center - left),
                                   (right - m) / (right - center)))
    w = np.concatenate([w, np.zeros((MEL_PAD - N_MELS, K_PAD))], axis=0)
    return w.T                                             # (256, 128)


def _split_bf16(m64):
    """f64 host matrix -> (hi, lo) bf16 pair with hi+lo ~ f32(m64)."""
    m32 = jnp.asarray(np.asarray(m64, dtype=np.float32))
    hi = m32.astype(jnp.bfloat16)
    lo = (m32 - hi.astype(jnp.float32)).astype(jnp.bfloat16)
    return hi, lo


_DFT_HI, _DFT_LO = _split_bf16(_composed_dft_matrix())
_MEL_HI, _MEL_LO = _split_bf16(_kaldi_mel_banks())


# --------------------------------- wrapper -----------------------------------
def lhotse_kaldifeat_fbank(pcm):
    """pcm: (B, num_samples) float32 in [-1, 1] -> (B, num_frames, N_MELS) f32."""
    B, num_samples = pcm.shape
    # TODO(synk): Kaldi's repeated-reflection edge handling for ultra-short
    # clips (< 200 samples) is not implemented in the fast framing path.
    assert num_samples >= 200, "framing path assumes num_samples >= 200"
    num_frames = (num_samples + FRAME_SHIFT // 2) // FRAME_SHIFT

    # Tile size: fill the MXU / amortize per-step overhead, but keep >= 2 grid
    # steps whenever possible so both v7x TensorCores get work.
    tn = min(MAX_TN, _round_up(num_frames, 8))
    if B * _cdiv(num_frames, tn) < 2 and num_frames >= 16:
        tn = _round_up(_cdiv(num_frames, 2), 8)
    n_pad = _cdiv(num_frames, tn) * tn

    # Framing (snip_edges=False): frame t = padded[160*t : 160*t + 400] where
    # padded = [120 reflected samples | pcm | 200 reflected samples | zeros].
    # Built from three shifted non-overlapping (n_pad, 160) chunk views — no
    # gather; the 400->512 column pad and row pad are folded in here too.
    pcm = pcm.astype(jnp.float32)
    pad_l = FRAME_LENGTH // 2 - FRAME_SHIFT // 2           # 120
    pad_r = 200                                            # covers last frame
    hop = FRAME_SHIFT
    L = hop * (n_pad + 2)
    parts = [jnp.flip(pcm[:, :pad_l], axis=1), pcm,
             jnp.flip(pcm[:, -pad_r:], axis=1)]
    cur = pad_l + num_samples + pad_r
    if cur < L:
        parts.append(jnp.zeros((B, L - cur), jnp.float32))
    padded = jnp.concatenate(parts, axis=1)[:, :L]

    c0 = padded[:, 0:hop * n_pad].reshape(B, n_pad, hop)
    c1 = padded[:, hop:hop * (n_pad + 1)].reshape(B, n_pad, hop)
    c2 = padded[:, 2 * hop:hop * (n_pad + 2)].reshape(B, n_pad, hop)
    tail = jnp.zeros((B, n_pad, PAD_LEN - 3 * hop), jnp.float32)
    # Columns 400..479 hold real samples past the window; DFT-matrix rows
    # >= 400 are exactly zero, so they contribute nothing.
    frames = jnp.concatenate([c0, c1, c2, tail], axis=2).reshape(
        B * n_pad, PAD_LEN)
    # TODO(synk): further HBM saving — feed hop-chunked PCM straight into the
    # kernel (memory_space=pl.ANY) and assemble the frame tile in VMEM.

    rows = B * n_pad
    steps = rows // tn
    flops = 6 * rows * (PAD_LEN * 2 * K_PAD + K_PAD * MEL_PAD)   # 3 bf16 passes/matmul
    bytes_accessed = (rows * (PAD_LEN + MEL_PAD) * 4
                      + 2 * PAD_LEN * 2 * K_PAD * 2
                      + 2 * K_PAD * MEL_PAD * 2)

    out = pl.pallas_call(
        fbank_kernel,
        out_shape=jax.ShapeDtypeStruct((rows, MEL_PAD), jnp.float32),
        grid_spec=pltpu.PrefetchScalarGridSpec(
            num_scalar_prefetch=0,
            grid=(steps,),
            in_specs=[
                pl.BlockSpec((tn, PAD_LEN), lambda i: (i, 0)),          # frames
                pl.BlockSpec((PAD_LEN, 2 * K_PAD), lambda i: (0, 0)),   # DFT hi
                pl.BlockSpec((PAD_LEN, 2 * K_PAD), lambda i: (0, 0)),   # DFT lo
                pl.BlockSpec((K_PAD, MEL_PAD), lambda i: (0, 0)),       # mel hi
                pl.BlockSpec((K_PAD, MEL_PAD), lambda i: (0, 0)),       # mel lo
            ],
            out_specs=pl.BlockSpec((tn, MEL_PAD), lambda i: (i, 0)),
        ),
        compiler_params=pltpu.CompilerParams(
            dimension_semantics=("parallel",),
            vmem_limit_bytes=32 * 1024 * 1024),
        cost_estimate=pl.CostEstimate(
            flops=int(flops),
            transcendentals=int(rows * MEL_PAD),
            bytes_accessed=int(bytes_accessed)),
    )(frames, _DFT_HI, _DFT_LO, _MEL_HI, _MEL_LO)

    return out.reshape(B, n_pad, MEL_PAD)[:, :num_frames, :N_MELS]


# ----------------------------------- main ------------------------------------
if __name__ == "__main__":
    key = jax.random.PRNGKey(0)
    B, num_samples = 2, 4000      # 0.25 s of 16 kHz audio per utterance
    pcm = jax.random.uniform(key, (B, num_samples), jnp.float32, -1.0, 1.0)

    feats = jax.block_until_ready(lhotse_kaldifeat_fbank(pcm))

    expected_frames = (num_samples + FRAME_SHIFT // 2) // FRAME_SHIFT
    assert feats.shape == (B, expected_frames, N_MELS), feats.shape
    assert feats.dtype == jnp.float32
    assert bool(jnp.all(jnp.isfinite(feats)))
    print("KERNEL_OK")
</pallas_src>

<mosaic_0001>
module attributes {stable_mosaic.version = 11 : i64} {
  func.func @fbank_kernel(%arg0: i32, %arg1: memref<32x512xf32, #tpu.memory_space<vmem>>, %arg2: memref<512x512xbf16, #tpu.memory_space<vmem>>, %arg3: memref<512x512xbf16, #tpu.memory_space<vmem>>, %arg4: memref<256x128xbf16, #tpu.memory_space<vmem>>, %arg5: memref<256x128xbf16, #tpu.memory_space<vmem>>, %arg6: memref<32x128xf32, #tpu.memory_space<vmem>>) attributes {dimension_semantics = [#tpu.dimension_semantics<parallel>], iteration_bounds = array<i64: 2>, scalar_prefetch = 0 : i64, scratch_operands = 0 : i64, tpu.core_type = #tpu.core_type<tc>, window_params = [{transform_indices = @transform_0, window_bounds = array<i64: 32, 512>}, {pipeline_mode = #tpu.pipeline_mode<synchronous>, transform_indices = @transform_1, window_bounds = array<i64: 512, 512>}, {pipeline_mode = #tpu.pipeline_mode<synchronous>, transform_indices = @transform_2, window_bounds = array<i64: 512, 512>}, {pipeline_mode = #tpu.pipeline_mode<synchronous>, transform_indices = @transform_3, window_bounds = array<i64: 256, 128>}, {pipeline_mode = #tpu.pipeline_mode<synchronous>, transform_indices = @transform_4, window_bounds = array<i64: 256, 128>}, {transform_indices = @transform_5, window_bounds = array<i64: 32, 128>}]} {
    %c0 = arith.constant 0 : index
    %c0_0 = arith.constant 0 : index
    %0 = vector.load %arg1[%c0, %c0_0] : memref<32x512xf32, #tpu.memory_space<vmem>>, vector<32x512xf32>
    %1 = arith.truncf %0 : vector<32x512xf32> to vector<32x512xbf16>
    %2 = arith.extf %1 : vector<32x512xbf16> to vector<32x512xf32>
    %3 = arith.subf %0, %2 : vector<32x512xf32>
    %4 = arith.truncf %3 : vector<32x512xf32> to vector<32x512xbf16>
    %c0_1 = arith.constant 0 : index
    %c0_2 = arith.constant 0 : index
    %5 = vector.load %arg2[%c0_1, %c0_2] : memref<512x512xbf16, #tpu.memory_space<vmem>>, vector<512x512xbf16>
    %c0_3 = arith.constant 0 : index
    %c0_4 = arith.constant 0 : index
    %6 = vector.load %arg3[%c0_3, %c0_4] : memref<512x512xbf16, #tpu.memory_space<vmem>>, vector<512x512xbf16>
    %cst = arith.constant dense<0.000000e+00> : vector<32x512xf32>
    %7 = tpu.matmul %1, %5, %cst {dimension_numbers = #tpu.dot_dimension_numbers<[1], [0], [0], [1], [0, 0, 1, 1], [], []>} : vector<32x512xbf16>, vector<512x512xbf16>, vector<32x512xf32> -> vector<32x512xf32>
    %cst_5 = arith.constant dense<0.000000e+00> : vector<32x512xf32>
    %8 = tpu.matmul %4, %5, %cst_5 {dimension_numbers = #tpu.dot_dimension_numbers<[1], [0], [0], [1], [0, 0, 1, 1], [], []>} : vector<32x512xbf16>, vector<512x512xbf16>, vector<32x512xf32> -> vector<32x512xf32>
    %9 = arith.addf %7, %8 : vector<32x512xf32>
    %cst_6 = arith.constant dense<0.000000e+00> : vector<32x512xf32>
    %10 = tpu.matmul %1, %6, %cst_6 {dimension_numbers = #tpu.dot_dimension_numbers<[1], [0], [0], [1], [0, 0, 1, 1], [], []>} : vector<32x512xbf16>, vector<512x512xbf16>, vector<32x512xf32> -> vector<32x512xf32>
    %11 = arith.addf %9, %10 : vector<32x512xf32>
    %12 = vector.extract_strided_slice %11 {offsets = [0, 0], sizes = [32, 256], strides = [1, 1]} : vector<32x512xf32> to vector<32x256xf32>
    %13 = vector.extract_strided_slice %11 {offsets = [0, 256], sizes = [32, 256], strides = [1, 1]} : vector<32x512xf32> to vector<32x256xf32>
    %14 = arith.mulf %12, %12 : vector<32x256xf32>
    %15 = arith.mulf %13, %13 : vector<32x256xf32>
    %16 = arith.addf %14, %15 : vector<32x256xf32>
    %17 = arith.truncf %16 : vector<32x256xf32> to vector<32x256xbf16>
    %18 = arith.extf %17 : vector<32x256xbf16> to vector<32x256xf32>
    %19 = arith.subf %16, %18 : vector<32x256xf32>
    %20 = arith.truncf %19 : vector<32x256xf32> to vector<32x256xbf16>
    %c0_7 = arith.constant 0 : index
    %c0_8 = arith.constant 0 : index
    %21 = vector.load %arg4[%c0_7, %c0_8] : memref<256x128xbf16, #tpu.memory_space<vmem>>, vector<256x128xbf16>
    %c0_9 = arith.constant 0 : index
    %c0_10 = arith.constant 0 : index
    %22 = vector.load %arg5[%c0_9, %c0_10] : memref<256x128xbf16, #tpu.memory_space<vmem>>, vector<256x128xbf16>
    %cst_11 = arith.constant dense<0.000000e+00> : vector<32x128xf32>
    %23 = tpu.matmul %17, %21, %cst_11 {dimension_numbers = #tpu.dot_dimension_numbers<[1], [0], [0], [1], [0, 0, 1, 1], [], []>} : vector<32x256xbf16>, vector<256x128xbf16>, vector<32x128xf32> -> vector<32x128xf32>
    %cst_12 = arith.constant dense<0.000000e+00> : vector<32x128xf32>
    %24 = tpu.matmul %20, %21, %cst_12 {dimension_numbers = #tpu.dot_dimension_numbers<[1], [0], [0], [1], [0, 0, 1, 1], [], []>} : vector<32x256xbf16>, vector<256x128xbf16>, vector<32x128xf32> -> vector<32x128xf32>
    %25 = arith.addf %23, %24 : vector<32x128xf32>
    %cst_13 = arith.constant dense<0.000000e+00> : vector<32x128xf32>
    %26 = tpu.matmul %17, %22, %cst_13 {dimension_numbers = #tpu.dot_dimension_numbers<[1], [0], [0], [1], [0, 0, 1, 1], [], []>} : vector<32x256xbf16>, vector<256x128xbf16>, vector<32x128xf32> -> vector<32x128xf32>
    %27 = arith.addf %25, %26 : vector<32x128xf32>
    %cst_14 = arith.constant 1.1920929E-7 : f32
    %28 = vector.broadcast %cst_14 : f32 to vector<32x128xf32>
    %29 = arith.maximumf %27, %28 : vector<32x128xf32>
    %30 = math.log %29 : vector<32x128xf32>
    %c0_15 = arith.constant 0 : index
    %c0_16 = arith.constant 0 : index
    %31 = vector.load %arg6[%c0_15, %c0_16] : memref<32x128xf32, #tpu.memory_space<vmem>>, vector<32x128xf32>
    tpu.vector_store %arg6[%c0_15, %c0_16], %30 {strides = array<i32>} : memref<32x128xf32, #tpu.memory_space<vmem>>, vector<32x128xf32>,
    return
  }
  func.func @transform_0(%arg0: i32) -> (i32, i32) {
    %c0_i32 = arith.constant 0 : i32
    %c0_i32_0 = arith.constant 0 : i32
    return %arg0, %c0_i32 : i32, i32
  }
  func.func @transform_1(%arg0: i32) -> (i32, i32) {
    %c0_i32 = arith.constant 0 : i32
    %c0_i32_0 = arith.constant 0 : i32
    %c0_i32_1 = arith.constant 0 : i32
    return %c0_i32, %c0_i32_0 : i32, i32
  }
  func.func @transform_2(%arg0: i32) -> (i32, i32) {
    %c0_i32 = arith.constant 0 : i32
    %c0_i32_0 = arith.constant 0 : i32
    %c0_i32_1 = arith.constant 0 : i32
    return %c0_i32, %c0_i32_0 : i32, i32
  }
  func.func @transform_3(%arg0: i32) -> (i32, i32) {
    %c0_i32 = arith.constant 0 : i32
    %c0_i32_0 = arith.constant 0 : i32
    %c0_i32_1 = arith.constant 0 : i32
    return %c0_i32, %c0_i32_0 : i32, i32
  }
  func.func @transform_4(%arg0: i32) -> (i32, i32) {
    %c0_i32 = arith.constant 0 : i32
    %c0_i32_0 = arith.constant 0 : i32
    %c0_i32_1 = arith.constant 0 : i32
    return %c0_i32, %c0_i32_0 : i32, i32
  }
  func.func @transform_5(%arg0: i32) -> (i32, i32) {
    %c0_i32 = arith.constant 0 : i32
    %c0_i32_0 = arith.constant 0 : i32
    return %arg0, %c0_i32 : i32, i32
  }
}

</mosaic_0001>

<bundles_post_ra>
// kernel: tpu_custom_call.1
= control target key start
LH: loop header
LB: loop body
LE: loop exit
PB: predicated region body
PF: predicated region fallthrough
CT: control target
= control target key end

     0   :  { %10 = vsyncpa [#allocation3], 0  ;;  %s5126_s0 = inlined_call_operand.hbm [shape: f32[64,512], index: 0, kind: input, shape index: {}]   ;;  %s5127_s1 = inlined_call_operand.hbm [shape: bf16[512,512], index: 1, kind: input, shape index: {}]   ;;  %s5128_s2 = inlined_call_operand.hbm [shape: bf16[512,512], index: 2, kind: input, shape index: {}]   ;;  %s5129_s3 = inlined_call_operand.hbm [shape: bf16[256,128], index: 3, kind: input, shape index: {}]   ;;  %s5130_s4 = inlined_call_operand.hbm [shape: bf16[256,128], index: 4, kind: input, shape index: {}]   ;;  %s5131_s5 = inlined_call_operand.hbm [shape: f32[64,128], index: 5, kind: output, shape index: {}]  }
   0x1   :  { %12 = vsyncpa [#allocation3 + $0x1], 0 }
   0x2   :  { %13 = vsyncpa [#allocation6], 0 }
   0x3   :  { %14 = vsyncpa [#allocation9], 0 }
   0x4   :  { %15 = vsyncpa [#allocation4], 0 }
   0x5   :  { %17 = vsyncpa [#allocation4 + $0x1], 0  ;;  %s4392_s18 = smov 0   ;;  %s4394_s19 = smov 0  }
   0x6   :  { %s4396_s20 = smov 0   ;;  %s4398_s21 = smov 0  }
   0x7 LB: > { %s4413_s22 = sadd.s32 4294967295, %s4346_s21   ;;  %s3153_s23 = sadd.s32 4294967294, %s4346_s21   ;;  %s4346_s21 = sphi %s4398_s21, %s5262_s21   ;;  %s4342_s20 = sphi %s4396_s20, %s5261_s20   ;;  %s4338_s19 = sphi %s4394_s19, %s5260_s19   ;;  %s4334_s18 = sphi %s4392_s18, %s5259_s18  }
   0x8   : > { %p43_p0 = scmp.ne.s32.totalorder %s4338_s19, %s4334_s18  ;;  %p5132_p1 = scmp.eq.s32.totalorder %s4413_s22, 0 }
   0x9   : > { %p157_p3 = scmp.eq.s32.totalorder %s3153_s23, 1  ;;  %p3154_p5 = scmp.ge.s32.totalorder %s4346_s21, 1 }
   0xa   : > { %p4422_p4 = por %p5132_p1, %p43_p0  ;;  %p164_p7 = scmp.lt.s32.totalorder %s4346_s21, 3 }
   0xb   : > { %p4427_p6 = por %p157_p3, %p43_p0  ;;  %s4348_s27 = smov [#allocation5]  }
   0xc   : > { %s5165_s24 = scalar_select %p4422_p4, 1, 0 }
   0xd   : > { %s5166_s25 = scalar_select %p4427_p6, 1, 0 }
   0xe   : > { %p4432_p8 = pnand %p3154_p5, %p164_p7  ;;  %s176_s28 = sshll.u32 %s4348_s27, 4  ;;  %s177_s28 = int_to_ptr.vmem [resolvable:$true] %s176_s28 }
   0xf   : > { %s4349_s30 = smov [#allocation8]   ;;  %s4153_s7 = scalar_lea.vmem %s177_s28, 16384 }
  0x10   : > { %s5167_s26 = scalar_select %p4432_p8, 1, 0 }
  0x11   : > { %p3587_p9 = pneg %p4432_p8  ;;  %s202_s6 = sshll.u32 %s4349_s30, 4  ;;  %s203_s6 = int_to_ptr.vmem [resolvable:$true] %s202_s6 }
  0x12   : > { %p4154_p13 = scmp.ne.s32.totalorder %s177_s28, %s4153_s7  ;;  %p4161_p5 = scmp.lt.s32.totalorder %s177_s28, %s177_s28 }
  0x13   : > { %p4441_p11 = pnand %p3587_p9, %p5132_p1  ;;  %p4162_p7 = scmp.lt.s32.totalorder %s4153_s7, %s4153_s7 }
  0x15   : > { %p4144_p12 = pneg %p4441_p11  ;;  %p4163_p10 = por %p4162_p7, %p4161_p5 }
  0x17   : > { %p4156_p0 = pnand %p4154_p13, %p4144_p12 }
  0x19   : > { %p4157_p3 = pneg %p4156_p0 }
  0x1b   : > { %p4164_p9 = pnand %p4163_p10, %p4157_p3 }
  0x1d   : > { %4167 = shalt.err (!%p4164_p9)
}
  0x1e   : > { %s4350_s8 = smov 256   ;;  %s4351_s9 = smov 16  }
  0x1f   : > { %3590 = dma.hbm_to_vmem [thread:$0]  (!%p4441_p11), %s5127_s1, 16384, %s177_s28, [#allocation6], %s4350_s8, %s4350_s8, %s4351_s9  }
  0x20   : > { %s4179_s12 = scalar_lea.vmem %s203_s6, 2048  ;;  %p4187_p10 = scmp.lt.s32.totalorder %s203_s6, %s203_s6 }
  0x21   : > { %p4180_p13 = scmp.ne.s32.totalorder %s203_s6, %s4179_s12  ;;  %p4188_p3 = scmp.lt.s32.totalorder %s4179_s12, %s4179_s12 }
  0x23   : > { %p4182_p0 = pnand %p4180_p13, %p4144_p12  ;;  %p4189_p7 = por %p4188_p3, %p4187_p10 }
  0x25   : > { %p4183_p5 = pneg %p4182_p0 }
  0x27   : > { %p4190_p9 = pnand %p4189_p7, %p4183_p5 }
  0x29   : > { %4193 = shalt.err (!%p4190_p9)
}
  0x2a   : > { %s4352_s13 = smov 64   ;;  %s4353_s14 = smov 4  }
  0x2b   : > { %3596 = dma.hbm_to_vmem [thread:$0]  (!%p4441_p11), %s5129_s3, 2048, %s203_s6, [#allocation9], %s4352_s13, %s4352_s13, %s4353_s14  }
  0x2c   : > { %s4354_s17 = smov [#allocation7]   ;;  %s4355_s27 = smov [#allocation10]  }
  0x2d   : > { %s189_s23 = sshll.u32 %s4354_s17, 4  ;;  %s215_s28 = sshll.u32 %s4355_s27, 4  ;;  %s190_s23 = int_to_ptr.vmem [resolvable:$true] %s189_s23  ;;  %s216_s28 = int_to_ptr.vmem [resolvable:$true] %s215_s28 }
  0x2e   : > { %s4205_s30 = scalar_lea.vmem %s190_s23, 16384  ;;  %p4213_p10 = scmp.lt.s32.totalorder %s190_s23, %s190_s23 }
  0x2f   : > { %p4206_p13 = scmp.ne.s32.totalorder %s190_s23, %s4205_s30  ;;  %p4214_p3 = scmp.lt.s32.totalorder %s4205_s30, %s4205_s30 }
  0x31   : > { %p4208_p0 = pnand %p4206_p13, %p4144_p12  ;;  %p4215_p7 = por %p4214_p3, %p4213_p10 }
  0x33   : > { %p4209_p5 = pneg %p4208_p0 }
  0x35   : > { %p4216_p9 = pnand %p4215_p7, %p4209_p5 }
  0x37   : > { %4219 = shalt.err (!%p4216_p9)
}
  0x38   : > { %3593 = dma.hbm_to_vmem [thread:$0]  (!%p4441_p11), %s5128_s2, 16384, %s190_s23, [#allocation6], %s4350_s8, %s4350_s8, %s4351_s9  }
  0x39   : > { %s4231_s10 = scalar_lea.vmem %s216_s28, 2048  ;;  %p4239_p2 = scmp.lt.s32.totalorder %s216_s28, %s216_s28 }
  0x3a   : > { %p4232_p1 = scmp.ne.s32.totalorder %s216_s28, %s4231_s10  ;;  %p4240_p10 = scmp.lt.s32.totalorder %s4231_s10, %s4231_s10 }
  0x3c   : > { %p4234_p13 = pnand %p4232_p1, %p4144_p12  ;;  %p4241_p5 = por %p4240_p10, %p4239_p2 }
  0x3e   : > { %p4235_p0 = pneg %p4234_p13 }
  0x40   : > { %p4242_p3 = pnand %p4241_p5, %p4235_p0 }
  0x42   : > { %4245 = shalt.err (!%p4242_p3)
}
  0x43   : > { %3599 = dma.hbm_to_vmem [thread:$0]  (!%p4441_p11), %s5130_s4, 2048, %s216_s28, [#allocation9], %s4352_s13, %s4352_s13, %s4353_s14  }
  0x44   : > { %s4492_s8 = sadd.s32 1, %s4346_s21   ;;  %s30_s9 = sadd.s32 1, %s4342_s20 }
  0x45   : > { %s27_s29 = ssub.s32 %s4346_s21, %s4492_s8  ;;  %p37_p2 = scmp.ne.s32.totalorder %s4342_s20, %s4338_s19 }
  0x46   : > { %p28_p1 = scmp.eq.s32.totalorder %s27_s29, 0  ;;  %p38_p12 = scmp.eq.s32.totalorder %s4346_s21, 0 }
  0x47   : > { %p5169_p9 = scmp.eq.s32.totalorder %s4413_s22, 1  ;;  %p3612_p0 = scmp.lt.s32.totalorder %s4346_s21, 2 }
  0x48   : > { %s4501_s15 = scalar_select %p28_p1, %s4342_s20, %s30_s9  }
  0x49   : > { %p39_p7 = por %p38_p12, %p37_p2  ;;  %p4505_p13 = por %p5169_p9, %p37_p2 }
  0x4a   : > { %s229_s17 = sand.u32 1, %s4342_s20   ;;  %s3465_s13 = sshll.u32 %s4346_s21, 11 }
  0x4b   : > { %s5170_s16 = scalar_select %p4505_p13, 1, 0 }
  0x4c   : > { %s3160_s23 = sshll.u32 %s229_s17, 7  ;;  %s4515_s28 = scalar_lea.hbm %s5126_s0, %s3465_s13 }
  0x4d   : > { %s233_s30 = scalar_lea.vmem [#allocation2], %s3160_s23  ;;  %p4519_p11 = pnand %p3612_p0, %p39_p7 }
  0x4e   : > { %s241_s6 = sshll.u32 %s233_s30, 4  ;;  %s4523_s10 = scalar_lea.sflag [#allocation3], %s229_s17  ;;  %s4517_s6 = int_to_ptr.vmem [resolvable:$true] %s241_s6 }
  0x4f   : > { %s4246_s11 = scalar_lea.hbm %s4515_s28, 2048  ;;  %p4248_p5 = pneg %p4519_p11 }
  0x50   : > { %p4247_p10 = scmp.ne.s32.totalorder %s4515_s28, %s4246_s11  ;;  %s4251_s9 = scalar_lea.hbm %s5126_s0, 4096 }
  0x51   : > { %p4252_p2 = scmp.lt.s32.totalorder %s4515_s28, %s5126_s0  ;;  %p4253_p12 = scmp.lt.s32.totalorder %s4251_s9, %s4246_s11 }
  0x52   : > { %p4249_p3 = pnand %p4248_p5, %p4247_p10 }
  0x53   : > { %p4254_p7 = por %p4253_p12, %p4252_p2 }
  0x54   : > { %p4250_p1 = pneg %p4249_p3 }
  0x56   : > { %p4255_p9 = pnand %p4254_p7, %p4250_p1 }
  0x58   : > { %4258 = shalt.err (!%p4255_p9)
}
  0x59   : > { %s4259_s17 = scalar_lea.vmem %s4517_s6, 2048  ;;  %s4356_s14 = smov [#allocation2]  }
  0x5a   : > { %p4260_p0 = scmp.ne.s32.totalorder %s4517_s6, %s4259_s17  ;;  %s4264_s27 = sshll.u32 %s4356_s14, 4  ;;  %s4265_s27 = int_to_ptr.vmem [resolvable:$false] %s4264_s27 }
  0x5b   : > { %s4266_s30 = scalar_lea.vmem %s4265_s27, 4096  ;;  %p4267_p3 = scmp.lt.s32.totalorder %s4517_s6, %s4265_s27 }
  0x5c   : > { %p4262_p6 = pnand %p4260_p0, %p4248_p5  ;;  %p4268_p13 = scmp.lt.s32.totalorder %s4266_s30, %s4259_s17 }
  0x5e   : > { %p4263_p10 = pneg %p4262_p6  ;;  %p4269_p4 = por %p4268_p13, %p4267_p3 }
  0x60   : > { %p4270_p8 = pnand %p4269_p4, %p4263_p10 }
  0x62   : > { %4273 = shalt.err (!%p4270_p8)
}
  0x63   : > { %s4357_s11 = smov 512   ;;  %s4358_s12 = smov 32  }
  0x64   : > { %3603 = dma.hbm_to_vmem [thread:$0]  (!%p4519_p11), %s4515_s28, 2048, %s4517_s6, %s4523_s10, %s4357_s11, %s4357_s11, %s4358_s12  }
  0x65   : > { %p5172_p5 = scmp.ne.s32.totalorder %s5167_s26, 0 }
  0x67   : > { %253 = sbr.rel (%p5172_p5) target bundleno = 988 (0x3dc), region = 40 }
  0x6c   : > { %s4547_s29 = sand.u32 1, %s4338_s19   ;;  %p5173_p4 = scmp.ne.s32.totalorder %s5165_s24, 0 }
  0x6d   : > { %s3165_s9 = sshll.u32 %s4547_s29, 7  ;;  %s256_s23 = scalar_lea.sflag [#allocation3], %s4547_s29 }
  0x6e   : > { %s4551_s13 = scalar_lea.vmem [#allocation2], %s3165_s9 }
  0x6f   : > { %4317 = dma.done.wait (%p5173_p4), %s256_s23, 2048  }
  0x70   : > { %4319 = vsyncadd (%p5173_p4), %s256_s23, 4294965248  ;;  %p5174_p6 = scmp.eq.s32.totalorder %s4413_s22, 0 }
  0x72   : > { %4321 = dma.done.wait (%p5174_p6), [#allocation6], 32768   ;;  %p5175_p8 = pmov %p5174_p6 }
  0x73   : > { %p5176_p13 = pmov %p5174_p6 }
  0x74   : > { %4323 = vsyncadd (%p5175_p8), [#allocation6], 4294934528 }
  0x75   : > { %4325 = dma.done.wait (%p5176_p13), [#allocation9], 4096   ;;  %p5177_p11 = pmov %p5174_p6 }
  0x76   : > { %v3662_v0 = vld [vmem:[#allocation5 + $0xe4] ss:$16 sps:$4 sm:$0xff]   ;;  %v3666_v2 = vld [vmem:[#allocation5 + $0xe0] ss:$16 sps:$4 sm:$0xff]   ;;  %v306_v46 = vld [vmem:[%s4551_s13 + $0x8] sm:$0xff]  ;;  %s3170_s24 = sshll.u32 %s4547_s29, 5 }
  0x77   : > { %4327 = vsyncadd (%p5177_p11), [#allocation9], 4294963200  ;;  %v3664_v1 = vld [vmem:[#allocation5 + $0x2e4] ss:$16 sps:$4 sm:$0xff]   ;;  %1265 = vmatprep.subr.bf16.mxu0 %v3662_v0  ;;  %v3667_v3 = vld [vmem:[#allocation5 + $0x2e0] ss:$16 sps:$4 sm:$0xff]  }
  0x78   : > { %1318 = vmatprep.subr.bf16.mxu1 %v3664_v1  ;;  %v3668_v4 = vld [vmem:[#allocation5 + $0xc4] ss:$16 sps:$4 sm:$0xff]   ;;  %1266 = vmatpush1.bf16.msra.mxu0 %v3666_v2  ;;  %v3672_v6 = vld [vmem:[#allocation5 + $0xc0] ss:$16 sps:$4 sm:$0xff]   ;;  %v310_v47 = vld [vmem:[%s4551_s13 + $0x28] sm:$0xff]  ;;  %s301_s26 = scalar_lea.vmem [#allocation11], %s3170_s24 }
  0x79   : > { %1319 = vmatpush1.bf16.msra.mxu1 %v3667_v3  ;;  %v3670_v5 = vld [vmem:[#allocation5 + $0x2c4] ss:$16 sps:$4 sm:$0xff]   ;;  %1267 = vmatprep.subr.bf16.mxu0 %v3668_v4  ;;  %v3673_v7 = vld [vmem:[#allocation5 + $0x2c0] ss:$16 sps:$4 sm:$0xff]   ;;  %v308_v48 = vld [vmem:[%s4551_s13 + $0x18] sm:$0xff]  ;;  %v4569_v53 = vpack.c.bf16 %v310_v47, %v306_v46  ;;  %s3042_s28 = sshll.u32 %s301_s26, 4  ;;  %s5078_s28 = int_to_ptr.vmem [resolvable:$true] %s3042_s28 }
  0x7a   : > { %1320 = vmatprep.subr.bf16.mxu1 %v3670_v5  ;;  %v3674_v8 = vld [vmem:[#allocation5 + $0xa4] ss:$16 sps:$4 sm:$0xff]   ;;  %v3678_v10 = vld [vmem:[#allocation5 + $0xa0] ss:$16 sps:$4 sm:$0xff]   ;;  %v312_v49 = vld [vmem:[%s4551_s13 + $0x38] sm:$0xff]  ;;  %s3466_s6 = sshll.u32 %s4413_s22, 9 }
  0x7b   : > { %v3676_v9 = vld [vmem:[#allocation5 + $0x2a4] ss:$16 sps:$4 sm:$0xff]   ;;  %v3679_v11 = vld [vmem:[#allocation5 + $0x2a0] ss:$16 sps:$4 sm:$0xff]   ;;  %v4571_v54 = vpack.c.bf16 %v312_v49, %v308_v48  ;;  %v330_v58 = vunpack.c.l.bf16 %v4569_v53  ;;  %v334_v59 = vunpack.c.h.bf16 %v4569_v53  ;;  %s5083_s17 = scalar_lea.hbm %s5131_s5, %s3466_s6  ;;  %s3029_s14 = scalar_lea.sflag [#allocation4], %s4547_s29 }
  0x7c   : > { %1268 = vmatpush1.bf16.msra.mxu0 %v3672_v6  ;;  %v3680_v12 = vld [vmem:[#allocation5 + $0x84] ss:$16 sps:$4 sm:$0xff]   ;;  %v3684_v14 = vld [vmem:[#allocation5 + $0x80] ss:$16 sps:$4 sm:$0xff]   ;;  %s4274_s27 = scalar_lea.vmem %s5078_s28, 512  ;;  %p5256_p2 = scmp.ne.s32.totalorder %s5170_s16, 0 }
  0x7d   : > { %1321 = vmatpush1.bf16.msra.mxu1 %v3673_v7  ;;  %1269 = vmatprep.subr.bf16.mxu0 %v3674_v8  ;;  %v3682_v13 = vld [vmem:[#allocation5 + $0x284] ss:$16 sps:$4 sm:$0xff]   ;;  %v3685_v15 = vld [vmem:[#allocation5 + $0x280] ss:$16 sps:$4 sm:$0xff]   ;;  %v332_v60 = vunpack.c.l.bf16 %v4571_v54  ;;  %v336_v61 = vunpack.c.h.bf16 %v4571_v54  ;;  %v346_v2 = vsub.f32 %v306_v46, %v330_v58  ;;  %v350_v3 = vsub.f32 %v310_v47, %v334_v59  ;;  %v4663_v46 = vld [vmem:[#allocation5 + $0x88] ss:$16 sps:$4 sm:$0xff]   ;;  %p4275_p1 = scmp.ne.s32.totalorder %s5078_s28, %s4274_s27 }
  0x7e   : > { %1322 = vmatprep.subr.bf16.mxu1 %v3676_v9  ;;  %v3686_v16 = vld [vmem:[#allocation5 + $0x64] ss:$16 sps:$4 sm:$0xff]   ;;  %v3690_v18 = vld [vmem:[#allocation5 + $0x60] ss:$16 sps:$4 sm:$0xff]   ;;  %5179 = vst [vmem:[#allocation17_spill] sm:$0xff] %v4663_v46  ;;  %v316_v58 = vld [vmem:[%s4551_s13 + $0x58] sm:$0xff] }
  0x7f   : > { %v3688_v17 = vld [vmem:[#allocation5 + $0x264] ss:$16 sps:$4 sm:$0xff]   ;;  %v3691_v19 = vld [vmem:[#allocation5 + $0x260] ss:$16 sps:$4 sm:$0xff]   ;;  %v348_v4 = vsub.f32 %v308_v48, %v332_v60  ;;  %v352_v7 = vsub.f32 %v312_v49, %v336_v61  ;;  %v4581_v8 = vpack.c.bf16 %v350_v3, %v346_v2  ;;  %v4665_v47 = vld [vmem:[#allocation5 + $0x288] ss:$16 sps:$4 sm:$0xff]   ;;  %p4276_p12 = pnand %p4275_p1, %p5256_p2 }
  0x80   : > { %1270 = vmatpush1.bf16.msra.mxu0 %v3678_v10  ;;  %v3692_v20 = vld [vmem:[#allocation5 + $0x44] ss:$16 sps:$4 sm:$0xff]   ;;  %v3696_v22 = vld [vmem:[#allocation5 + $0x40] ss:$16 sps:$4 sm:$0xff]   ;;  %5180 = vst [vmem:[#allocation18_spill] sm:$0xff] %v4665_v47  ;;  %v320_v60 = vld [vmem:[%s4551_s13 + $0x78] sm:$0xff] }
  0x81   : > { %1323 = vmatpush1.bf16.msra.mxu1 %v3679_v11  ;;  %1271 = vmatprep.subr.bf16.mxu0 %v3680_v12  ;;  %v3694_v21 = vld [vmem:[#allocation5 + $0x244] ss:$16 sps:$4 sm:$0xff]   ;;  %v3697_v23 = vld [vmem:[#allocation5 + $0x240] ss:$16 sps:$4 sm:$0xff]   ;;  %v4583_v11 = vpack.c.bf16 %v352_v7, %v348_v4  ;;  %v4669_v48 = vld [vmem:[#allocation5 + $0x6c] ss:$16 sps:$4 sm:$0xff]   ;;  %p4277_p7 = pneg %p4276_p12 }
  0x82   : > { %1324 = vmatprep.subr.bf16.mxu1 %v3682_v13  ;;  %v3698_v24 = vld [vmem:[#allocation5 + $0x24] ss:$16 sps:$4 sm:$0xff]   ;;  %v3702_v26 = vld [vmem:[#allocation5 + $0x20] ss:$16 sps:$4 sm:$0xff]   ;;  %1297 = vmatprep.mubr.bf16.mxu0 %v4581_v8  ;;  %5181 = vst [vmem:[#allocation19_spill] sm:$0xff] %v4669_v48  ;;  %s4359_s22 = smov [#allocation11]  }
  0x83   : > { %v3700_v25 = vld [vmem:[#allocation5 + $0x224] ss:$16 sps:$4 sm:$0xff]   ;;  %v3703_v27 = vld [vmem:[#allocation5 + $0x220] ss:$16 sps:$4 sm:$0xff]   ;;  %1350 = vmatprep.mubr.bf16.mxu1 %v4583_v11  ;;  %v4673_v49 = vld [vmem:[#allocation5 + $0x26c] ss:$16 sps:$4 sm:$0xff]  }
  0x84   : > { %1272 = vmatpush1.bf16.msra.mxu0 %v3684_v14  ;;  %v3704_v28 = vld [vmem:[#allocation5 + $0x4] ss:$16 sps:$4 sm:$0xff]   ;;  %v3708_v30 = vld [vmem:[#allocation5] ss:$16 sps:$4 sm:$0xff]   ;;  %5182 = vst [vmem:[#allocation20_spill] sm:$0xff] %v4673_v49  ;;  %s4278_s30 = sshll.u32 %s4359_s22, 4  ;;  %s4279_s30 = int_to_ptr.vmem [resolvable:$false] %s4278_s30 }
  0x85   : > { %1325 = vmatpush1.bf16.msra.mxu1 %v3685_v15  ;;  %1273 = vmatprep.subr.bf16.mxu0 %v3686_v16  ;;  %v3706_v29 = vld [vmem:[#allocation5 + $0x204] ss:$16 sps:$4 sm:$0xff]   ;;  %v3709_v31 = vld [vmem:[#allocation5 + $0x200] ss:$16 sps:$4 sm:$0xff]   ;;  %v4701_v3 = vld [vmem:[#allocation5 + $0x48] ss:$16 sps:$4 sm:$0xff]   ;;  %p4281_p9 = scmp.lt.s32.totalorder %s5078_s28, %s4279_s30 }
  0x86   : > { %1326 = vmatprep.subr.bf16.mxu1 %v3688_v17  ;;  %v3710_v32 = vld [vmem:[#allocation5 + $0x1e4] ss:$16 sps:$4 sm:$0xff]   ;;  %v3714_v34 = vld [vmem:[#allocation5 + $0x1e0] ss:$16 sps:$4 sm:$0xff]   ;;  %v4703_v4 = vld [vmem:[#allocation5 + $0x248] ss:$16 sps:$4 sm:$0xff]  }
  0x87   : > { %v3712_v33 = vld [vmem:[#allocation5 + $0x3e4] ss:$16 sps:$4 sm:$0xff]   ;;  %v3715_v35 = vld [vmem:[#allocation5 + $0x3e0] ss:$16 sps:$4 sm:$0xff]   ;;  %s4280_s11 = scalar_lea.vmem %s4279_s30, 1024 }
  0x88   : > { %1274 = vmatpush1.bf16.msra.mxu0 %v3690_v18  ;;  %v3716_v36 = vld [vmem:[#allocation5 + $0x1c4] ss:$16 sps:$4 sm:$0xff]   ;;  %v3720_v38 = vld [vmem:[#allocation5 + $0x1c0] ss:$16 sps:$4 sm:$0xff]   ;;  %p4282_p0 = scmp.lt.s32.totalorder %s4280_s11, %s4274_s27 }
  0x89   : > { %1327 = vmatpush1.bf16.msra.mxu1 %v3691_v19  ;;  %1275 = vmatprep.subr.bf16.mxu0 %v3692_v20  ;;  %v3718_v37 = vld [vmem:[#allocation5 + $0x3c4] ss:$16 sps:$4 sm:$0xff]   ;;  %v3721_v39 = vld [vmem:[#allocation5 + $0x3c0] ss:$16 sps:$4 sm:$0xff]  }
  0x8a   : > { %1328 = vmatprep.subr.bf16.mxu1 %v3694_v21  ;;  %v3722_v40 = vld [vmem:[#allocation5 + $0x1a4] ss:$16 sps:$4 sm:$0xff]   ;;  %v3726_v42 = vld [vmem:[#allocation5 + $0x1a0] ss:$16 sps:$4 sm:$0xff]   ;;  %p4283_p10 = por %p4282_p0, %p4281_p9 }
  0x8b   : > { %v3724_v41 = vld [vmem:[#allocation5 + $0x3a4] ss:$16 sps:$4 sm:$0xff]   ;;  %v3727_v43 = vld [vmem:[#allocation5 + $0x3a0] ss:$16 sps:$4 sm:$0xff]  }
  0x8c   : > { %1276 = vmatpush1.bf16.msra.mxu0 %v3696_v22  ;;  %v3728_v44 = vld [vmem:[#allocation5 + $0x184] ss:$16 sps:$4 sm:$0xff]   ;;  %v3732_v50 = vld [vmem:[#allocation5 + $0x180] ss:$16 sps:$4 sm:$0xff]   ;;  %p4284_p3 = pnand %p4283_p10, %p4277_p7 }
  0x8d   : > { %1329 = vmatpush1.bf16.msra.mxu1 %v3697_v23  ;;  %1277 = vmatprep.subr.bf16.mxu0 %v3698_v24  ;;  %v3730_v45 = vld [vmem:[#allocation5 + $0x384] ss:$16 sps:$4 sm:$0xff]   ;;  %v3733_v51 = vld [vmem:[#allocation5 + $0x380] ss:$16 sps:$4 sm:$0xff]  }
  0x8e   : > { %1330 = vmatprep.subr.bf16.mxu1 %v3700_v25  ;;  %v3734_v52 = vld [vmem:[#allocation5 + $0x164] ss:$16 sps:$4 sm:$0xff]   ;;  %v3738_v56 = vld [vmem:[#allocation5 + $0x160] ss:$16 sps:$4 sm:$0xff]  }
  0x8f   : > { %v3736_v55 = vld [vmem:[#allocation5 + $0x364] ss:$16 sps:$4 sm:$0xff]   ;;  %v3739_v57 = vld [vmem:[#allocation5 + $0x360] ss:$16 sps:$4 sm:$0xff]  }
  0x90   : > { %1278 = vmatpush1.bf16.msra.mxu0 %v3702_v26  ;;  %v305_v62 = vld [vmem:[%s4551_s13] sm:$0xff]  ;;  %v307_v1 = vld [vmem:[%s4551_s13 + $0x10] sm:$0xff] }
  0x91   : > { %1331 = vmatpush1.bf16.msra.mxu1 %v3703_v27  ;;  %1279 = vmatprep.subr.bf16.mxu0 %v3704_v28  ;;  %v3740_v63 = vld [vmem:[#allocation5 + $0x144] ss:$16 sps:$4 sm:$0xff]   ;;  %v3744_v9 = vld [vmem:[#allocation5 + $0x140] ss:$16 sps:$4 sm:$0xff]  }
  0x92   : > { %1332 = vmatprep.subr.bf16.mxu1 %v3706_v29  ;;  %v309_v0 = vld [vmem:[%s4551_s13 + $0x20] sm:$0xff]  ;;  %v311_v5 = vld [vmem:[%s4551_s13 + $0x30] sm:$0xff] }
  0x93   : > { %v3742_v6 = vld [vmem:[#allocation5 + $0x344] ss:$16 sps:$4 sm:$0xff]   ;;  %v3745_v10 = vld [vmem:[#allocation5 + $0x340] ss:$16 sps:$4 sm:$0xff]   ;;  %v4585_v12 = vpack.c.bf16 %v309_v0, %v305_v62  ;;  %v4587_v13 = vpack.c.bf16 %v311_v5, %v307_v1 }
  0x94   : > { %1280 = vmatpush1.bf16.msra.mxu0 %v3708_v30  ;;  %v4589_v14 = vld [vmem:[#allocation5 + $0x124] ss:$16 sps:$4 sm:$0xff]   ;;  %v4595_v16 = vld [vmem:[#allocation5 + $0x120] ss:$16 sps:$4 sm:$0xff]   ;;  %v4615_v30 = vld [vmem:[#allocation5 + $0xec] ss:$16 sps:$4 sm:$0xff]  }
  0x95   : > { %1333 = vmatpush1.bf16.msra.mxu1 %v3709_v31  ;;  %1281 = vmatprep.subr.bf16.mxu0 %v3710_v32  ;;  %v4591_v15 = vld [vmem:[#allocation5 + $0x324] ss:$16 sps:$4 sm:$0xff]   ;;  %v4597_v17 = vld [vmem:[#allocation5 + $0x320] ss:$16 sps:$4 sm:$0xff]   ;;  %v329_v18 = vunpack.c.l.bf16 %v4585_v12  ;;  %v333_v19 = vunpack.c.h.bf16 %v4585_v12  ;;  %v331_v20 = vunpack.c.l.bf16 %v4587_v13  ;;  %v335_v21 = vunpack.c.h.bf16 %v4587_v13  ;;  %v4619_v31 = vld [vmem:[#allocation5 + $0x2ec] ss:$16 sps:$4 sm:$0xff]  }
  0x96   : > { %1334 = vmatprep.subr.bf16.mxu1 %v3712_v33  ;;  %v4603_v22 = vld [vmem:[#allocation5 + $0x104] ss:$16 sps:$4 sm:$0xff]   ;;  %v4609_v24 = vld [vmem:[#allocation5 + $0x100] ss:$16 sps:$4 sm:$0xff]  }
  0x97   : > { %v4607_v23 = vld [vmem:[#allocation5 + $0x304] ss:$16 sps:$4 sm:$0xff]   ;;  %v4611_v25 = vld [vmem:[#allocation5 + $0x300] ss:$16 sps:$4 sm:$0xff]   ;;  %v345_v26 = vsub.f32 %v305_v62, %v329_v18  ;;  %v349_v27 = vsub.f32 %v309_v0, %v333_v19  ;;  %v347_v28 = vsub.f32 %v307_v1, %v331_v20  ;;  %v351_v29 = vsub.f32 %v311_v5, %v335_v21  ;;  %v4719_v21 = vld [vmem:[#allocation5 + $0x22c] ss:$16 sps:$4 sm:$0xff]  }
  0x98   : > { %1282 = vmatpush2.bf16.msra.mxu0 %v3714_v34  ;;  %v4625_v34 = vld [vmem:[#allocation5 + $0xe8] ss:$16 sps:$4 sm:$0xff]   ;;  %v313_v61 = vld [vmem:[%s4551_s13 + $0x40] sm:$0xff]  ;;  %v315_v1 = vld [vmem:[%s4551_s13 + $0x50] sm:$0xff] }
  0x99   : > { %1335 = vmatpush2.bf16.msra.mxu1 %v3715_v35  ;;  %1283 = vmatprep.subr.bf16.mxu0 %v3716_v36  ;;  %v4621_v32 = vpack.c.bf16 %v349_v27, %v345_v26  ;;  %v4623_v33 = vpack.c.bf16 %v351_v29, %v347_v28  ;;  %v4627_v35 = vld [vmem:[#allocation5 + $0x2e8] ss:$16 sps:$4 sm:$0xff]   ;;  %v4631_v36 = vld [vmem:[#allocation5 + $0xcc] ss:$16 sps:$4 sm:$0xff]   ;;  %v317_v62 = vld [vmem:[%s4551_s13 + $0x60] sm:$0xff] }
  0x9a   : > { %1336 = vmatprep.subr.bf16.mxu1 %v3718_v37  ;;  %v4635_v37 = vld [vmem:[#allocation5 + $0x2cc] ss:$16 sps:$4 sm:$0xff]   ;;  %v4697_v0 = vpack.c.bf16 %v317_v62, %v313_v61  ;;  %v319_v2 = vld [vmem:[%s4551_s13 + $0x70] sm:$0xff] }
  0x9b   : > { %v4707_v7 = vpack.c.bf16 %v319_v2, %v315_v1 }
  0x9c   : > { %1284 = vmatpush2.bf16.msra.mxu0 %v3720_v38  ;;  %v4639_v38 = vld [vmem:[#allocation5 + $0xc8] ss:$16 sps:$4 sm:$0xff]   ;;  %v337_v19 = vunpack.c.l.bf16 %v4697_v0  ;;  %v341_v20 = vunpack.c.h.bf16 %v4697_v0 }
  0x9d   : > { %1337 = vmatpush2.bf16.msra.mxu1 %v3721_v39  ;;  %1285 = vmatprep.subr.bf16.mxu0 %v3722_v40  ;;  %v4641_v39 = vld [vmem:[#allocation5 + $0x2c8] ss:$16 sps:$4 sm:$0xff]   ;;  %v4645_v40 = vld [vmem:[#allocation5 + $0xac] ss:$16 sps:$4 sm:$0xff]   ;;  %v339_v28 = vunpack.c.l.bf16 %v4707_v7  ;;  %v343_v29 = vunpack.c.h.bf16 %v4707_v7 }
  0x9e   : > { %1338 = vmatprep.subr.bf16.mxu1 %v3724_v41  ;;  %v4649_v41 = vld [vmem:[#allocation5 + $0x2ac] ss:$16 sps:$4 sm:$0xff]  }
  0xa0   : > { %1286 = vmatpush2.bf16.msra.mxu0 %v3726_v42  ;;  %v4651_v42 = vld [vmem:[#allocation5 + $0xa8] ss:$16 sps:$4 sm:$0xff]  }
  0xa1   : > { %1339 = vmatpush2.bf16.msra.mxu1 %v3727_v43  ;;  %1287 = vmatprep.subr.bf16.mxu0 %v3728_v44  ;;  %v4653_v43 = vld [vmem:[#allocation5 + $0x2a8] ss:$16 sps:$4 sm:$0xff]   ;;  %v4657_v44 = vld [vmem:[#allocation5 + $0x8c] ss:$16 sps:$4 sm:$0xff]  }
  0xa2   : > { %1340 = vmatprep.subr.bf16.mxu1 %v3730_v45  ;;  %v4661_v45 = vld [vmem:[#allocation5 + $0x28c] ss:$16 sps:$4 sm:$0xff]  }
  0xa3   : > { %5178 = vst [vmem:[#allocation16_spill] sm:$0xff] %v4661_v45 }
  0xa4   : > { %1288 = vmatpush2.bf16.msra.mxu0 %v3732_v50  ;;  %v4675_v50 = vld [vmem:[#allocation5 + $0x68] ss:$16 sps:$4 sm:$0xff]  }
  0xa5   : > { %1341 = vmatpush2.bf16.msra.mxu1 %v3733_v51  ;;  %1289 = vmatprep.subr.bf16.mxu0 %v3734_v52  ;;  %5183 = vst [vmem:[#allocation21_spill] sm:$0xff] %v4675_v50  ;;  %v4677_v51 = vld [vmem:[#allocation5 + $0x268] ss:$16 sps:$4 sm:$0xff]   ;;  %v4679_v52 = vld [vmem:[#allocation5 + $0x4c] ss:$16 sps:$4 sm:$0xff]  }
  0xa6   : > { %1342 = vmatprep.subr.bf16.mxu1 %v3736_v55  ;;  %5184 = vst [vmem:[#allocation22_spill] sm:$0xff] %v4677_v51  ;;  %5185 = vst [vmem:[#allocation23_spill] sm:$0xff] %v4679_v52  ;;  %v4681_v55 = vld [vmem:[#allocation5 + $0x24c] ss:$16 sps:$4 sm:$0xff]  }
  0xa7   : > { %5186 = vst [vmem:[#allocation24_spill] sm:$0xff] %v4681_v55 }
  0xa8   : > { %1290 = vmatpush2.bf16.msra.mxu0 %v3738_v56  ;;  %v314_v56 = vld [vmem:[%s4551_s13 + $0x48] sm:$0xff] }
  0xa9   : > { %1343 = vmatpush2.bf16.msra.mxu1 %v3739_v57  ;;  %1291 = vmatprep.subr.bf16.mxu0 %v3740_v63  ;;  %v318_v57 = vld [vmem:[%s4551_s13 + $0x68] sm:$0xff]  ;;  %v4695_v63 = vpack.c.bf16 %v320_v60, %v316_v58 }
  0xaa   : > { %1344 = vmatprep.subr.bf16.mxu1 %v3742_v6  ;;  %v4690_v59 = vpack.c.bf16 %v318_v57, %v314_v56 }
  0xab   : > { %v344_v18 = vunpack.c.h.bf16 %v4695_v63 }
  0xac   : > { %1292 = vmatpush2.bf16.msra.mxu0 %v3744_v9  ;;  %v338_v5 = vunpack.c.l.bf16 %v4690_v59  ;;  %v342_v6 = vunpack.c.h.bf16 %v4690_v59  ;;  %v4711_v9 = vld [vmem:[#allocation5 + $0x2c] ss:$16 sps:$4 sm:$0xff]  }
  0xad   : > { %1345 = vmatpush2.bf16.msra.mxu1 %v3745_v10  ;;  %1293 = vmatprep.subr.bf16.mxu0 %v4589_v14  ;;  %v340_v10 = vunpack.c.l.bf16 %v4695_v63 }
  0xae   : > { %1346 = vmatprep.subr.bf16.mxu1 %v4591_v15  ;;  %v354_v26 = vsub.f32 %v314_v56, %v338_v5  ;;  %v358_v27 = vsub.f32 %v318_v57, %v342_v6  ;;  %v4731_v56 = vld [vmem:[#allocation5 + $0xc] ss:$16 sps:$4 sm:$0xff]   ;;  %v4775_v5 = vld [vmem:[#allocation5 + $0x3c8] ss:$16 sps:$4 sm:$0xff]  }
  0xaf   : > { %5187 = vst [vmem:[#allocation25_spill] sm:$0xff] %v4775_v5  ;;  %v4777_v6 = vld [vmem:[#allocation5 + $0x1ac] ss:$16 sps:$4 sm:$0xff]  }
  0xb0   : > { %1294 = vmatpush2.bf16.msra.mxu0 %v4595_v16  ;;  %5188 = vst [vmem:[#allocation26_spill] sm:$0xff] %v4777_v6 }
  0xb1   : > { %1347 = vmatpush2.bf16.msra.mxu1 %v4597_v17  ;;  %1295 = vmatprep.subr.bf16.mxu0 %v4603_v22 }
  0xb2   : > { %1348 = vmatprep.subr.bf16.mxu1 %v4607_v23 }
  0xb4   : > { %1296 = vmatpush2.bf16.msra.mxu0 %v4609_v24 }
  0xb5   : > { %1349 = vmatpush2.bf16.msra.mxu1 %v4611_v25  ;;  %1371 = vmatprep.subr.bf16.mxu0 %v4615_v30 }
  0xb6   : > { %1424 = vmatprep.subr.bf16.mxu1 %v4619_v31 }
  0xb7   : > { %1298 = vmatmul.mubr.bf16.vlgmr.msra.gmra.mxu0 %v4621_v32 }
  0xb8   : > { %1351 = vmatmul.mubr.bf16.vlgmr.msra.gmra.mxu1 %v4623_v33  ;;  %1372 = vmatpush1.bf16.msra.mxu0 %v4625_v34 }
  0xb9   : > { %1425 = vmatpush1.bf16.msra.mxu1 %v4627_v35  ;;  %1373 = vmatprep.subr.bf16.mxu0 %v4631_v36 }
  0xba   : > { %1426 = vmatprep.subr.bf16.mxu1 %v4635_v37 }
  0xbc   : > { %1374 = vmatpush1.bf16.msra.mxu0 %v4639_v38 }
  0xbd   : > { %1427 = vmatpush1.bf16.msra.mxu1 %v4641_v39  ;;  %1375 = vmatprep.subr.bf16.mxu0 %v4645_v40 }
  0xbe   : > { %1428 = vmatprep.subr.bf16.mxu1 %v4649_v41 }
  0xc0   : > { %1376 = vmatpush1.bf16.msra.mxu0 %v4651_v42 }
  0xc1   : > { %1429 = vmatpush1.bf16.msra.mxu1 %v4653_v43  ;;  %1377 = vmatprep.subr.bf16.mxu0 %v4657_v44 }
  0xc2   : > { %1430 = vmatprep.subr.bf16.mxu1 %v4661_v45  ;;  %v4727_v45 = vpack.c.bf16 %v358_v27, %v354_v26  ;;  %v4799_v26 = vld [vmem:[#allocation5 + $0x388] ss:$16 sps:$4 sm:$0xff]   ;;  %v4801_v27 = vld [vmem:[#allocation5 + $0x16c] ss:$16 sps:$4 sm:$0xff]  }
  0xc3   : > { %5195 = vst [vmem:[#allocation33_spill] sm:$0xff] %v4799_v26  ;;  %5196 = vst [vmem:[#allocation34_spill] sm:$0xff] %v4801_v27 }
  0xc4   : > { %1378 = vmatpush1.bf16.msra.mxu0 %v4663_v46  ;;  %v4725_v46 = vld [vmem:[#allocation5 + $0x228] ss:$16 sps:$4 sm:$0xff]   ;;  %1307 = vmatprep.mubr.bf16.mxu0 %v4727_v45 }
  0xc5   : > { %1431 = vmatpush1.bf16.msra.mxu1 %v4665_v47  ;;  %1379 = vmatprep.subr.bf16.mxu0 %v4669_v48  ;;  %v357_v48 = vsub.f32 %v317_v62, %v341_v20  ;;  %v4723_v47 = vld [vmem:[#allocation5 + $0x28] ss:$16 sps:$4 sm:$0xff]  }
  0xc6   : > { %1432 = vmatprep.subr.bf16.mxu1 %v4673_v49  ;;  %v353_v49 = vsub.f32 %v313_v61, %v337_v19  ;;  %v4743_v62 = vld [vmem:[#allocation5 + $0x8] ss:$16 sps:$4 sm:$0xff]   ;;  %v4791_v19 = vld [vmem:[#allocation5 + $0x38c] ss:$16 sps:$4 sm:$0xff]  }
  0xc7   : > { %5193 = vst [vmem:[#allocation31_spill] sm:$0xff] %v4791_v19  ;;  %v4797_v20 = vld [vmem:[#allocation5 + $0x188] ss:$16 sps:$4 sm:$0xff]  }
  0xc8   : > { %1380 = vmatpush1.bf16.msra.mxu0 %v4675_v50  ;;  %v360_v50 = vsub.f32 %v320_v60, %v344_v18  ;;  %v4739_v60 = vld [vmem:[#allocation5 + $0x20c] ss:$16 sps:$4 sm:$0xff]   ;;  %5194 = vst [vmem:[#allocation32_spill] sm:$0xff] %v4797_v20 }
  0xc9   : > { %1433 = vmatpush1.bf16.msra.mxu1 %v4677_v51  ;;  %1381 = vmatprep.subr.bf16.mxu0 %v4679_v52  ;;  %v356_v51 = vsub.f32 %v316_v58, %v340_v10  ;;  %v355_v52 = vsub.f32 %v315_v1, %v339_v28  ;;  %v4735_v58 = vpack.c.bf16 %v357_v48, %v353_v49  ;;  %v4745_v1 = vld [vmem:[#allocation5 + $0x208] ss:$16 sps:$4 sm:$0xff]   ;;  %v4751_v48 = vld [vmem:[#allocation5 + $0x3ec] ss:$16 sps:$4 sm:$0xff]  }
  0xca   : > { %1434 = vmatprep.subr.bf16.mxu1 %v4681_v55  ;;  %v359_v55 = vsub.f32 %v319_v2, %v343_v29  ;;  %v4759_v49 = vld [vmem:[#allocation5 + $0x1e8] ss:$16 sps:$4 sm:$0xff]   ;;  %v4789_v18 = vld [vmem:[#allocation5 + $0x18c] ss:$16 sps:$4 sm:$0xff]  }
  0xcb   : > { %v4733_v57 = vpack.c.bf16 %v360_v50, %v356_v51  ;;  %v4749_v50 = vld [vmem:[#allocation5 + $0x1ec] ss:$16 sps:$4 sm:$0xff]   ;;  %1308 = vmatmul.mubr.bf16.gmra.mxu0 %v4735_v58  ;;  %v4761_v51 = vld [vmem:[#allocation5 + $0x3e8] ss:$16 sps:$4 sm:$0xff]   ;;  %5192 = vst [vmem:[#allocation30_spill] sm:$0xff] %v4789_v18 }
  0xcc   : > { %1382 = vmatpush1.bf16.msra.mxu0 %v4701_v3  ;;  %v4741_v61 = vpack.c.bf16 %v359_v55, %v355_v52  ;;  %1403 = vmatprep.mubr.bf16.mxu0 %v4581_v8  ;;  %v4765_v52 = vld [vmem:[#allocation5 + $0x1cc] ss:$16 sps:$4 sm:$0xff]   ;;  %v4773_v2 = vld [vmem:[#allocation5 + $0x1c8] ss:$16 sps:$4 sm:$0xff]  }
  0xcd   : > { %1435 = vmatpush1.bf16.msra.mxu1 %v4703_v4  ;;  %1383 = vmatprep.subr.bf16.mxu0 %v4711_v9  ;;  %v4767_v55 = vld [vmem:[#allocation5 + $0x3cc] ss:$16 sps:$4 sm:$0xff]   ;;  %v4787_v10 = vld [vmem:[#allocation5 + $0x3a8] ss:$16 sps:$4 sm:$0xff]  }
  0xce   : > { %1436 = vmatprep.subr.bf16.mxu1 %v4719_v21  ;;  %1360 = vmatprep.mubr.bf16.mxu1 %v4733_v57  ;;  %v4779_v8 = vld [vmem:[#allocation5 + $0x3ac] ss:$16 sps:$4 sm:$0xff]   ;;  %5191 = vst [vmem:[#allocation29_spill] sm:$0xff] %v4787_v10  ;;  %v4809_v29 = vld [vmem:[#allocation5 + $0x168] ss:$16 sps:$4 sm:$0xff]  }
  0xcf   : > { %1361 = vmatmul.mubr.bf16.gmra.mxu1 %v4741_v61  ;;  %5189 = vst [vmem:[#allocation27_spill] sm:$0xff] %v4779_v8  ;;  %v4803_v28 = vld [vmem:[#allocation5 + $0x36c] ss:$16 sps:$4 sm:$0xff]  }
  0xd0   : > { %1384 = vmatpush1.bf16.msra.mxu0 %v4723_v47  ;;  %1456 = vmatprep.mubr.bf16.mxu1 %v4583_v11  ;;  %v4785_v11 = vld [vmem:[#allocation5 + $0x1a8] ss:$16 sps:$4 sm:$0xff]   ;;  %5197 = vst [vmem:[#allocation35_spill] sm:$0xff] %v4803_v28 }
  0xd1   : > { %1437 = vmatpush1.bf16.msra.mxu1 %v4725_v46  ;;  %1385 = vmatprep.subr.bf16.mxu0 %v4731_v56  ;;  %5190 = vst [vmem:[#allocation28_spill] sm:$0xff] %v4785_v11 }
  0xd2   : > { %1438 = vmatprep.subr.bf16.mxu1 %v4739_v60 }
  0xd4   : > { %1386 = vmatpush1.bf16.msra.mxu0 %v4743_v62 }
  0xd5   : > { %1439 = vmatpush1.bf16.msra.mxu1 %v4745_v1  ;;  %1387 = vmatprep.subr.bf16.mxu0 %v4749_v50 }
  0xd6   : > { %1440 = vmatprep.subr.bf16.mxu1 %v4751_v48 }
  0xd8   : > { %1388 = vmatpush2.bf16.msra.mxu0 %v4759_v49 }
  0xd9   : > { %1441 = vmatpush2.bf16.msra.mxu1 %v4761_v51  ;;  %1389 = vmatprep.subr.bf16.mxu0 %v4765_v52 }
  0xda   : > { %1442 = vmatprep.subr.bf16.mxu1 %v4767_v55 }
  0xdc   : > { %1390 = vmatpush2.bf16.msra.mxu0 %v4773_v2 }
  0xdd   : > { %1443 = vmatpush2.bf16.msra.mxu1 %v4775_v5  ;;  %1391 = vmatprep.subr.bf16.mxu0 %v4777_v6  ;;  %v4811_v6 = vld [vmem:[#allocation5 + $0x368] ss:$16 sps:$4 sm:$0xff]   ;;  %v4815_v5 = vld [vmem:[#allocation5 + $0x34c] ss:$16 sps:$4 sm:$0xff]  }
  0xde   : > { %1444 = vmatprep.subr.bf16.mxu1 %v4779_v8  ;;  %5198 = vst [vmem:[#allocation36_spill] sm:$0xff] %v4811_v6  ;;  %v4813_v8 = vld [vmem:[#allocation5 + $0x14c] ss:$16 sps:$4 sm:$0xff]  }
  0xdf   : > { %5199 = vst [vmem:[#allocation37_spill] sm:$0xff] %v4813_v8 }
  0xe0   : > { %1392 = vmatpush2.bf16.msra.mxu0 %v4785_v11  ;;  %v4827_v11 = vld [vmem:[#allocation5 + $0x32c] ss:$16 sps:$4 sm:$0xff]  }
  0xe1   : > { %1445 = vmatpush2.bf16.msra.mxu1 %v4787_v10  ;;  %1393 = vmatprep.subr.bf16.mxu0 %v4789_v18  ;;  %v4821_v10 = vld [vmem:[#allocation5 + $0x148] ss:$16 sps:$4 sm:$0xff]   ;;  %5202 = vst [vmem:[#allocation40_spill] sm:$0xff] %v4827_v11 }
  0xe2   : > { %1446 = vmatprep.subr.bf16.mxu1 %v4791_v19  ;;  %v4823_v18 = vld [vmem:[#allocation5 + $0x348] ss:$16 sps:$4 sm:$0xff]   ;;  %v4825_v19 = vld [vmem:[#allocation5 + $0x12c] ss:$16 sps:$4 sm:$0xff]  }
  0xe3   : > { %5200 = vst [vmem:[#allocation38_spill] sm:$0xff] %v4823_v18  ;;  %5201 = vst [vmem:[#allocation39_spill] sm:$0xff] %v4825_v19 }
  0xe4   : > { %1394 = vmatpush2.bf16.msra.mxu0 %v4797_v20  ;;  %v4839_v20 = vld [vmem:[#allocation5 + $0x30c] ss:$16 sps:$4 sm:$0xff]  }
  0xe5   : > { %1447 = vmatpush2.bf16.msra.mxu1 %v4799_v26  ;;  %1395 = vmatprep.subr.bf16.mxu0 %v4801_v27  ;;  %v4833_v26 = vld [vmem:[#allocation5 + $0x128] ss:$16 sps:$4 sm:$0xff]  }
  0xe6   : > { %1448 = vmatprep.subr.bf16.mxu1 %v4803_v28  ;;  %5203 = vst [vmem:[#allocation41_spill] sm:$0xff] %v4833_v26  ;;  %v4835_v27 = vld [vmem:[#allocation5 + $0x328] ss:$16 sps:$4 sm:$0xff]   ;;  %v4837_v28 = vld [vmem:[#allocation5 + $0x10c] ss:$16 sps:$4 sm:$0xff]  }
  0xe7   : > { %5204 = vst [vmem:[#allocation42_spill] sm:$0xff] %v4835_v27  ;;  %5205 = vst [vmem:[#allocation43_spill] sm:$0xff] %v4837_v28 }
  0xe8   : > { %1396 = vmatpush2.bf16.msra.mxu0 %v4809_v29 }
  0xe9   : > { %1449 = vmatpush2.bf16.msra.mxu1 %v4811_v6  ;;  %1397 = vmatprep.subr.bf16.mxu0 %v4813_v8  ;;  %v4845_v6 = vld [vmem:[#allocation5 + $0x108] ss:$16 sps:$4 sm:$0xff]  }
  0xea   : > { %1450 = vmatprep.subr.bf16.mxu1 %v4815_v5  ;;  %v4847_v8 = vld [vmem:[#allocation5 + $0x308] ss:$16 sps:$4 sm:$0xff]  }
  0xeb   : > { %5206 = vst [vmem:[#allocation44_spill] sm:$0xff] %v4847_v8 }
  0xec   : > { %1398 = vmatpush2.bf16.msra.mxu0 %v4821_v10 }
  0xed   : > { %1451 = vmatpush2.bf16.msra.mxu1 %v4823_v18  ;;  %1399 = vmatprep.subr.bf16.mxu0 %v4825_v19  ;;  %v4086_v18 = vld [vmem:[#allocation5 + $0xe4] ss:$16 sps:$4 sm:$0xff]  }
  0xee   : > { %1452 = vmatprep.subr.bf16.mxu1 %v4827_v11  ;;  %v4087_v19 = vld [vmem:[#allocation5 + $0x2e4] ss:$16 sps:$4 sm:$0xff]   ;;  %v4088_v11 = vld [vmem:[#allocation5 + $0xe0] ss:$16 sps:$4 sm:$0xff]  }
  0xf0   : > { %1400 = vmatpush2.bf16.msra.mxu0 %v4833_v26  ;;  %v4089_v26 = vld [vmem:[#allocation5 + $0x2e0] ss:$16 sps:$4 sm:$0xff]  }
  0xf1   : > { %1453 = vmatpush2.bf16.msra.mxu1 %v4835_v27  ;;  %1401 = vmatprep.subr.bf16.mxu0 %v4837_v28  ;;  %v4090_v27 = vld [vmem:[#allocation5 + $0xc4] ss:$16 sps:$4 sm:$0xff]  }
  0xf2   : > { %1454 = vmatprep.subr.bf16.mxu1 %v4839_v20  ;;  %v4091_v28 = vld [vmem:[#allocation5 + $0x2c4] ss:$16 sps:$4 sm:$0xff]  }
  0xf4   : > { %1402 = vmatpush2.bf16.msra.mxu0 %v4845_v6 }
  0xf5   : > { %1455 = vmatpush2.bf16.msra.mxu1 %v4847_v8  ;;  %1477 = vmatprep.subr.bf16.mxu0 %v4086_v18  ;;  %v4092_v8 = vld [vmem:[#allocation5 + $0xc0] ss:$16 sps:$4 sm:$0xff]  }
  0xf6   : > { %1530 = vmatprep.subr.bf16.mxu1 %v4087_v19  ;;  %v4093_v18 = vld [vmem:[#allocation5 + $0x2c0] ss:$16 sps:$4 sm:$0xff]   ;;  %v4094_v19 = vld [vmem:[#allocation5 + $0xa4] ss:$16 sps:$4 sm:$0xff]  }
  0xf7   : > { %1404 = vmatmul.mubr.bf16.vlgmr.msra.gmra.mxu0 %v4621_v32  ;;  %v4095_v32 = vld [vmem:[#allocation5 + $0x2a4] ss:$16 sps:$4 sm:$0xff]  }
  0xf8   : > { %1457 = vmatmul.mubr.bf16.vlgmr.msra.gmra.mxu1 %v4623_v33  ;;  %1478 = vmatpush1.bf16.msra.mxu0 %v4088_v11  ;;  %v4096_v33 = vld [vmem:[#allocation5 + $0xa0] ss:$16 sps:$4 sm:$0xff]  }
  0xf9   : > { %1531 = vmatpush1.bf16.msra.mxu1 %v4089_v26  ;;  %1479 = vmatprep.subr.bf16.mxu0 %v4090_v27  ;;  %v4097_v11 = vld [vmem:[#allocation5 + $0x2a0] ss:$16 sps:$4 sm:$0xff]   ;;  %v4098_v26 = vld [vmem:[#allocation5 + $0x84] ss:$16 sps:$4 sm:$0xff]  }
  0xfa   : > { %1532 = vmatprep.subr.bf16.mxu1 %v4091_v28  ;;  %1413 = vmatprep.mubr.bf16.mxu0 %v4727_v45  ;;  %v4099_v45 = vld [vmem:[#allocation5 + $0x284] ss:$16 sps:$4 sm:$0xff]   ;;  %v4105_v28 = vld [vmem:[#allocation5 + $0x260] ss:$16 sps:$4 sm:$0xff]  }
  0xfb   : > { %1466 = vmatprep.mubr.bf16.mxu1 %v4733_v57  ;;  %v4100_v57 = vld [vmem:[#allocation5 + $0x80] ss:$16 sps:$4 sm:$0xff]   ;;  %v4102_v27 = vld [vmem:[#allocation5 + $0x64] ss:$16 sps:$4 sm:$0xff]  }
  0xfc   : > { %1480 = vmatpush1.bf16.msra.mxu0 %v4092_v8  ;;  %v4101_v8 = vld [vmem:[#allocation5 + $0x280] ss:$16 sps:$4 sm:$0xff]  }
  0xfd   : > { %1533 = vmatpush1.bf16.msra.mxu1 %v4093_v18  ;;  %1481 = vmatprep.subr.bf16.mxu0 %v4094_v19  ;;  %v4106_v18 = vld [vmem:[#allocation5 + $0x44] ss:$16 sps:$4 sm:$0xff]  }
  0xfe   : > { %1534 = vmatprep.subr.bf16.mxu1 %v4095_v32  ;;  %v4107_v19 = vld [vmem:[#allocation5 + $0x244] ss:$16 sps:$4 sm:$0xff]   ;;  %v4108_v32 = vld [vmem:[#allocation5 + $0x40] ss:$16 sps:$4 sm:$0xff]  }
  0xff   : > { %1414 = vmatmul.mubr.bf16.gmra.mxu0 %v4735_v58  ;;  %v4103_v58 = vld [vmem:[#allocation5 + $0x264] ss:$16 sps:$4 sm:$0xff]  }
 0x100   : > { %1467 = vmatmul.mubr.bf16.gmra.mxu1 %v4741_v61  ;;  %1482 = vmatpush1.bf16.msra.mxu0 %v4096_v33  ;;  %v4104_v61 = vld [vmem:[#allocation5 + $0x60] ss:$16 sps:$4 sm:$0xff]  }
 0x101   : > { %1535 = vmatpush1.bf16.msra.mxu1 %v4097_v11  ;;  %1483 = vmatprep.subr.bf16.mxu0 %v4098_v26  ;;  %v4109_v33 = vld [vmem:[#allocation5 + $0x240] ss:$16 sps:$4 sm:$0xff]   ;;  %v4110_v11 = vld [vmem:[#allocation5 + $0x24] ss:$16 sps:$4 sm:$0xff]  }
 0x102   : > { %1536 = vmatprep.subr.bf16.mxu1 %v4099_v45  ;;  %1509 = vmatprep.mubr.bf16.mxu0 %v4569_v53  ;;  %v4111_v26 = vld [vmem:[#allocation5 + $0x224] ss:$16 sps:$4 sm:$0xff]   ;;  %v4112_v45 = vld [vmem:[#allocation5 + $0x20] ss:$16 sps:$4 sm:$0xff]  }
 0x103   : > { %1562 = vmatprep.mubr.bf16.mxu1 %v4571_v54 }
 0x104   : > { %1484 = vmatpush1.bf16.msra.mxu0 %v4100_v57  ;;  %v4113_v57 = vld [vmem:[#allocation5 + $0x220] ss:$16 sps:$4 sm:$0xff]  }
 0x105   : > { %1537 = vmatpush1.bf16.msra.mxu1 %v4101_v8  ;;  %1485 = vmatprep.subr.bf16.mxu0 %v4102_v27  ;;  %v4114_v8 = vld [vmem:[#allocation5 + $0x4] ss:$16 sps:$4 sm:$0xff]  }
 0x106   : > { %1538 = vmatprep.subr.bf16.mxu1 %v4103_v58  ;;  %v4115_v27 = vld [vmem:[#allocation5 + $0x204] ss:$16 sps:$4 sm:$0xff]   ;;  %v4116_v58 = vld [vmem:[#allocation5] ss:$16 sps:$4 sm:$0xff]  }
 0x108   : > { %1486 = vmatpush1.bf16.msra.mxu0 %v4104_v61  ;;  %v4117_v61 = vld [vmem:[#allocation5 + $0x200] ss:$16 sps:$4 sm:$0xff]  }
 0x109   : > { %1539 = vmatpush1.bf16.msra.mxu1 %v4105_v28  ;;  %1487 = vmatprep.subr.bf16.mxu0 %v4106_v18  ;;  %v4118_v28 = vld [vmem:[#allocation5 + $0x1e4] ss:$16 sps:$4 sm:$0xff]  }
 0x10a   : > { %1540 = vmatprep.subr.bf16.mxu1 %v4107_v19  ;;  %v4119_v18 = vld [vmem:[#allocation5 + $0x3e4] ss:$16 sps:$4 sm:$0xff]   ;;  %v4120_v19 = vld [vmem:[#allocation5 + $0x1e0] ss:$16 sps:$4 sm:$0xff]  }
 0x10c   : > { %1488 = vmatpush1.bf16.msra.mxu0 %v4108_v32  ;;  %v4121_v32 = vld [vmem:[#allocation5 + $0x3e0] ss:$16 sps:$4 sm:$0xff]  }
 0x10d   : > { %1541 = vmatpush1.bf16.msra.mxu1 %v4109_v33  ;;  %1489 = vmatprep.subr.bf16.mxu0 %v4110_v11  ;;  %v4122_v33 = vld [vmem:[#allocation5 + $0x1c4] ss:$16 sps:$4 sm:$0xff]  }
 0x10e   : > { %1542 = vmatprep.subr.bf16.mxu1 %v4111_v26  ;;  %v4123_v11 = vld [vmem:[#allocation5 + $0x3c4] ss:$16 sps:$4 sm:$0xff]   ;;  %v4124_v26 = vld [vmem:[#allocation5 + $0x1c0] ss:$16 sps:$4 sm:$0xff]  }
 0x110   : > { %1490 = vmatpush1.bf16.msra.mxu0 %v4112_v45  ;;  %v4125_v45 = vld [vmem:[#allocation5 + $0x3c0] ss:$16 sps:$4 sm:$0xff]  }
 0x111   : > { %1543 = vmatpush1.bf16.msra.mxu1 %v4113_v57  ;;  %1491 = vmatprep.subr.bf16.mxu0 %v4114_v8  ;;  %v4126_v57 = vld [vmem:[#allocation5 + $0x1a4] ss:$16 sps:$4 sm:$0xff]  }
 0x112   : > { %1544 = vmatprep.subr.bf16.mxu1 %v4115_v27  ;;  %v4127_v8 = vld [vmem:[#allocation5 + $0x3a4] ss:$16 sps:$4 sm:$0xff]   ;;  %v4128_v27 = vld [vmem:[#allocation5 + $0x1a0] ss:$16 sps:$4 sm:$0xff]  }
 0x114   : > { %1492 = vmatpush1.bf16.msra.mxu0 %v4116_v58  ;;  %v4129_v58 = vld [vmem:[#allocation5 + $0x3a0] ss:$16 sps:$4 sm:$0xff]  }
 0x115   : > { %1545 = vmatpush1.bf16.msra.mxu1 %v4117_v61  ;;  %1493 = vmatprep.subr.bf16.mxu0 %v4118_v28  ;;  %v4130_v61 = vld [vmem:[#allocation5 + $0x184] ss:$16 sps:$4 sm:$0xff]  }
 0x116   : > { %1546 = vmatprep.subr.bf16.mxu1 %v4119_v18  ;;  %v4131_v28 = vld [vmem:[#allocation5 + $0x384] ss:$16 sps:$4 sm:$0xff]   ;;  %v4132_v18 = vld [vmem:[#allocation5 + $0x180] ss:$16 sps:$4 sm:$0xff]  }
 0x118   : > { %1494 = vmatpush2.bf16.msra.mxu0 %v4120_v19  ;;  %v4133_v19 = vld [vmem:[#allocation5 + $0x380] ss:$16 sps:$4 sm:$0xff]  }
 0x119   : > { %1547 = vmatpush2.bf16.msra.mxu1 %v4121_v32  ;;  %1495 = vmatprep.subr.bf16.mxu0 %v4122_v33  ;;  %v4134_v32 = vld [vmem:[#allocation5 + $0x164] ss:$16 sps:$4 sm:$0xff]  }
 0x11a   : > { %1548 = vmatprep.subr.bf16.mxu1 %v4123_v11  ;;  %v4135_v33 = vld [vmem:[#allocation5 + $0x364] ss:$16 sps:$4 sm:$0xff]   ;;  %v4136_v11 = vld [vmem:[#allocation5 + $0x160] ss:$16 sps:$4 sm:$0xff]  }
 0x11c   : > { %1496 = vmatpush2.bf16.msra.mxu0 %v4124_v26  ;;  %v4137_v26 = vld [vmem:[#allocation5 + $0x360] ss:$16 sps:$4 sm:$0xff]  }
 0x11d   : > { %1549 = vmatpush2.bf16.msra.mxu1 %v4125_v45  ;;  %1497 = vmatprep.subr.bf16.mxu0 %v4126_v57  ;;  %v4138_v45 = vld [vmem:[#allocation5 + $0x144] ss:$16 sps:$4 sm:$0xff]  }
 0x11e   : > { %1550 = vmatprep.subr.bf16.mxu1 %v4127_v8  ;;  %v4139_v57 = vld [vmem:[#allocation5 + $0x344] ss:$16 sps:$4 sm:$0xff]   ;;  %v4140_v8 = vld [vmem:[#allocation5 + $0x140] ss:$16 sps:$4 sm:$0xff]  }
 0x120   : > { %1498 = vmatpush2.bf16.msra.mxu0 %v4128_v27  ;;  %v4141_v27 = vld [vmem:[#allocation5 + $0x340] ss:$16 sps:$4 sm:$0xff]  }
 0x121   : > { %1551 = vmatpush2.bf16.msra.mxu1 %v4129_v58  ;;  %1499 = vmatprep.subr.bf16.mxu0 %v4130_v61  ;;  %v3871_v58 = vld [vmem:[#allocation7 + $0x2a4] ss:$16 sps:$4 sm:$0xff]  }
 0x122   : > { %1552 = vmatprep.subr.bf16.mxu1 %v4131_v28 }
 0x124   : > { %1500 = vmatpush2.bf16.msra.mxu0 %v4132_v18 }
 0x125   : > { %1553 = vmatpush2.bf16.msra.mxu1 %v4133_v19  ;;  %1501 = vmatprep.subr.bf16.mxu0 %v4134_v32  ;;  %v3866_v32 = vld [vmem:[#allocation7 + $0xa0] ss:$16 sps:$4 sm:$0xff]  }
 0x126   : > { %1554 = vmatprep.subr.bf16.mxu1 %v4135_v33  ;;  %v3869_v33 = vld [vmem:[#allocation7 + $0x2a0] ss:$16 sps:$4 sm:$0xff]  }
 0x128   : > { %1502 = vmatpush2.bf16.msra.mxu0 %v4136_v11 }
 0x129   : > { %1555 = vmatpush2.bf16.msra.mxu1 %v4137_v26  ;;  %1503 = vmatprep.subr.bf16.mxu0 %v4138_v45  ;;  %v3874_v45 = vld [vmem:[#allocation7 + $0x84] ss:$16 sps:$4 sm:$0xff]  }
 0x12a   : > { %1556 = vmatprep.subr.bf16.mxu1 %v4139_v57  ;;  %v3877_v57 = vld [vmem:[#allocation7 + $0x284] ss:$16 sps:$4 sm:$0xff]  }
 0x12c   : > { %1504 = vmatpush2.bf16.msra.mxu0 %v4140_v8 }
 0x12d   : > { %1557 = vmatpush2.bf16.msra.mxu1 %v4141_v27  ;;  %1505 = vmatprep.subr.bf16.mxu0 %v4589_v14  ;;  %v5207_v14 = vld [vmem:[#allocation16_spill] sm:$0xff] }
 0x12e   : > { %1558 = vmatprep.subr.bf16.mxu1 %v4591_v15  ;;  %v5208_v15 = vld [vmem:[#allocation17_spill] sm:$0xff]  ;;  %v3872_v27 = vld [vmem:[#allocation7 + $0x80] ss:$16 sps:$4 sm:$0xff]  }
 0x130   : > { %1506 = vmatpush2.bf16.msra.mxu0 %v4595_v16  ;;  %v5209_v16 = vld [vmem:[#allocation18_spill] sm:$0xff] }
 0x131   : > { %1559 = vmatpush2.bf16.msra.mxu1 %v4597_v17  ;;  %1507 = vmatprep.subr.bf16.mxu0 %v4603_v22  ;;  %v5210_v17 = vld [vmem:[#allocation19_spill] sm:$0xff]  ;;  %v5211_v22 = vld [vmem:[#allocation20_spill] sm:$0xff] }
 0x132   : > { %1560 = vmatprep.subr.bf16.mxu1 %v4607_v23  ;;  %v5212_v23 = vld [vmem:[#allocation21_spill] sm:$0xff] }
 0x134   : > { %1508 = vmatpush2.bf16.msra.mxu0 %v4609_v24  ;;  %v5213_v24 = vld [vmem:[#allocation22_spill] sm:$0xff] }
 0x135   : > { %1561 = vmatpush2.bf16.msra.mxu1 %v4611_v25  ;;  %1583 = vmatprep.subr.bf16.mxu0 %v4615_v30  ;;  %v5214_v25 = vld [vmem:[#allocation23_spill] sm:$0xff]  ;;  %v5215_v30 = vld [vmem:[#allocation24_spill] sm:$0xff] }
 0x136   : > { %1636 = vmatprep.subr.bf16.mxu1 %v4619_v31  ;;  %v5216_v31 = vld [vmem:[#allocation25_spill] sm:$0xff] }
 0x137   : > { %1510 = vmatmul.mubr.bf16.vlgmr.msra.gmra.mxu0 %v4585_v12 }
 0x138   : > { %1563 = vmatmul.mubr.bf16.vlgmr.msra.gmra.mxu1 %v4587_v13  ;;  %1584 = vmatpush1.bf16.msra.mxu0 %v4625_v34  ;;  %v5217_v34 = vld [vmem:[#allocation26_spill] sm:$0xff] }
 0x139   : > { %1637 = vmatpush1.bf16.msra.mxu1 %v4627_v35  ;;  %1585 = vmatprep.subr.bf16.mxu0 %v4631_v36  ;;  %v5218_v35 = vld [vmem:[#allocation27_spill] sm:$0xff]  ;;  %v5219_v36 = vld [vmem:[#allocation28_spill] sm:$0xff] }
 0x13a   : > { %1638 = vmatprep.subr.bf16.mxu1 %v4635_v37  ;;  %1519 = vmatprep.mubr.bf16.mxu0 %v4690_v59  ;;  %v5220_v37 = vld [vmem:[#allocation29_spill] sm:$0xff] }
 0x13b   : > { %1572 = vmatprep.mubr.bf16.mxu1 %v4695_v63 }
 0x13c   : > { %1586 = vmatpush1.bf16.msra.mxu0 %v4639_v38  ;;  %v5221_v38 = vld [vmem:[#allocation30_spill] sm:$0xff] }
 0x13d   : > { %1639 = vmatpush1.bf16.msra.mxu1 %v4641_v39  ;;  %1587 = vmatprep.subr.bf16.mxu0 %v4645_v40  ;;  %v5222_v39 = vld [vmem:[#allocation31_spill] sm:$0xff]  ;;  %v5223_v40 = vld [vmem:[#allocation32_spill] sm:$0xff] }
 0x13e   : > { %1640 = vmatprep.subr.bf16.mxu1 %v4649_v41  ;;  %v5224_v41 = vld [vmem:[#allocation33_spill] sm:$0xff] }
 0x13f   : > { %1520 = vmatmul.mubr.bf16.gmra.mxu0 %v4697_v0 }
 0x140   : > { %1573 = vmatmul.mubr.bf16.gmra.mxu1 %v4707_v7  ;;  %1588 = vmatpush1.bf16.msra.mxu0 %v4651_v42  ;;  %v5225_v42 = vld [vmem:[#allocation34_spill] sm:$0xff] }
 0x141   : > { %1641 = vmatpush1.bf16.msra.mxu1 %v4653_v43  ;;  %1589 = vmatprep.subr.bf16.mxu0 %v4657_v44  ;;  %v5226_v43 = vld [vmem:[#allocation35_spill] sm:$0xff]  ;;  %v5227_v44 = vld [vmem:[#allocation36_spill] sm:$0xff] }
 0x142   : > { %1642 = vmatprep.subr.bf16.mxu1 %v5207_v14  ;;  %1615 = vmatprep.mubr.bf16.mxu0 %v4569_v53  ;;  %v3875_v14 = vld [vmem:[#allocation7 + $0x280] ss:$16 sps:$4 sm:$0xff]  }
 0x143   : > { %1668 = vmatprep.mubr.bf16.mxu1 %v4571_v54 }
 0x144   : > { %1590 = vmatpush1.bf16.msra.mxu0 %v5208_v15  ;;  %v3880_v15 = vld [vmem:[#allocation7 + $0x64] ss:$16 sps:$4 sm:$0xff]  }
 0x145   : > { %1643 = vmatpush1.bf16.msra.mxu1 %v5209_v16  ;;  %1591 = vmatprep.subr.bf16.mxu0 %v5210_v17  ;;  %v3883_v16 = vld [vmem:[#allocation7 + $0x264] ss:$16 sps:$4 sm:$0xff]   ;;  %v3878_v17 = vld [vmem:[#allocation7 + $0x60] ss:$16 sps:$4 sm:$0xff]  }
 0x146   : > { %1644 = vmatprep.subr.bf16.mxu1 %v5211_v22  ;;  %v3881_v22 = vld [vmem:[#allocation7 + $0x260] ss:$16 sps:$4 sm:$0xff]  }
 0x148   : > { %1592 = vmatpush1.bf16.msra.mxu0 %v5212_v23  ;;  %v3886_v23 = vld [vmem:[#allocation7 + $0x44] ss:$16 sps:$4 sm:$0xff]  }
 0x149   : > { %1645 = vmatpush1.bf16.msra.mxu1 %v5213_v24  ;;  %1593 = vmatprep.subr.bf16.mxu0 %v5214_v25  ;;  %v3889_v24 = vld [vmem:[#allocation7 + $0x244] ss:$16 sps:$4 sm:$0xff]   ;;  %v3884_v25 = vld [vmem:[#allocation7 + $0x40] ss:$16 sps:$4 sm:$0xff]  }
 0x14a   : > { %1646 = vmatprep.subr.bf16.mxu1 %v5215_v30  ;;  %v3887_v30 = vld [vmem:[#allocation7 + $0x240] ss:$16 sps:$4 sm:$0xff]  }
 0x14c   : > { %1594 = vmatpush1.bf16.msra.mxu0 %v4701_v3  ;;  %v5230_v3 = vld [vmem:[#allocation39_spill] sm:$0xff] }
 0x14d   : > { %1647 = vmatpush1.bf16.msra.mxu1 %v4703_v4  ;;  %1595 = vmatprep.subr.bf16.mxu0 %v4711_v9  ;;  %v5231_v4 = vld [vmem:[#allocation40_spill] sm:$0xff]  ;;  %v5232_v9 = vld [vmem:[#allocation41_spill] sm:$0xff] }
 0x14e   : > { %1648 = vmatprep.subr.bf16.mxu1 %v4719_v21  ;;  %v5233_v21 = vld [vmem:[#allocation42_spill] sm:$0xff] }
 0x150   : > { %1596 = vmatpush1.bf16.msra.mxu0 %v4723_v47  ;;  %v5229_v47 = vld [vmem:[#allocation38_spill] sm:$0xff] }
 0x151   : > { %1649 = vmatpush1.bf16.msra.mxu1 %v4725_v46  ;;  %1597 = vmatprep.subr.bf16.mxu0 %v4731_v56  ;;  %v5228_v46 = vld [vmem:[#allocation37_spill] sm:$0xff]  ;;  %v5234_v56 = vld [vmem:[#allocation43_spill] sm:$0xff] }
 0x152   : > { %1650 = vmatprep.subr.bf16.mxu1 %v4739_v60  ;;  %v3856_v60 = vld [vmem:[#allocation7 + $0xe4] ss:$16 sps:$4 sm:$0xff]  }
 0x154   : > { %1598 = vmatpush1.bf16.msra.mxu0 %v4743_v62  ;;  %v3859_v62 = vld [vmem:[#allocation7 + $0x2e4] ss:$16 sps:$4 sm:$0xff]  }
 0x155   : > { %1651 = vmatpush1.bf16.msra.mxu1 %v4745_v1  ;;  %1599 = vmatprep.subr.bf16.mxu0 %v4749_v50  ;;  %v5235_v1 = vld [vmem:[#allocation44_spill] sm:$0xff] }
 0x156   : > { %1652 = vmatprep.subr.bf16.mxu1 %v4751_v48  ;;  %v3854_v50 = vld [vmem:[#allocation7 + $0xe0] ss:$16 sps:$4 sm:$0xff]  }
 0x157   : > { %v3857_v48 = vld [vmem:[#allocation7 + $0x2e0] ss:$16 sps:$4 sm:$0xff]  }
 0x158   : > { %1600 = vmatpush2.bf16.msra.mxu0 %v4759_v49  ;;  %v3862_v49 = vld [vmem:[#allocation7 + $0xc4] ss:$16 sps:$4 sm:$0xff]  }
 0x159   : > { %1653 = vmatpush2.bf16.msra.mxu1 %v4761_v51  ;;  %1601 = vmatprep.subr.bf16.mxu0 %v4765_v52  ;;  %v3865_v51 = vld [vmem:[#allocation7 + $0x2c4] ss:$16 sps:$4 sm:$0xff]  }
 0x15a   : > { %1654 = vmatprep.subr.bf16.mxu1 %v4767_v55 }
 0x15c   : > { %1602 = vmatpush2.bf16.msra.mxu0 %v4773_v2 }
 0x15d   : > { %1655 = vmatpush2.bf16.msra.mxu1 %v5216_v31  ;;  %1603 = vmatprep.subr.bf16.mxu0 %v5217_v34  ;;  %v3892_v31 = vld [vmem:[#allocation7 + $0x24] ss:$16 sps:$4 sm:$0xff]  }
 0x15e   : > { %1656 = vmatprep.subr.bf16.mxu1 %v5218_v35  ;;  %v3895_v34 = vld [vmem:[#allocation7 + $0x224] ss:$16 sps:$4 sm:$0xff]   ;;  %v3890_v35 = vld [vmem:[#allocation7 + $0x20] ss:$16 sps:$4 sm:$0xff]  }
 0x160   : > { %1604 = vmatpush2.bf16.msra.mxu0 %v5219_v36  ;;  %v3893_v36 = vld [vmem:[#allocation7 + $0x220] ss:$16 sps:$4 sm:$0xff]  }
 0x161   : > { %1657 = vmatpush2.bf16.msra.mxu1 %v5220_v37  ;;  %1605 = vmatprep.subr.bf16.mxu0 %v5221_v38  ;;  %v3898_v37 = vld [vmem:[#allocation7 + $0x4] ss:$16 sps:$4 sm:$0xff]  }
 0x162   : > { %1658 = vmatprep.subr.bf16.mxu1 %v5222_v39  ;;  %v3901_v38 = vld [vmem:[#allocation7 + $0x204] ss:$16 sps:$4 sm:$0xff]  }
 0x164   : > { %1606 = vmatpush2.bf16.msra.mxu0 %v5223_v40 }
 0x165   : > { %1659 = vmatpush2.bf16.msra.mxu1 %v5224_v41  ;;  %1607 = vmatprep.subr.bf16.mxu0 %v5225_v42  ;;  %v3896_v41 = vld [vmem:[#allocation7] ss:$16 sps:$4 sm:$0xff]  }
 0x166   : > { %1660 = vmatprep.subr.bf16.mxu1 %v5226_v43  ;;  %v3899_v42 = vld [vmem:[#allocation7 + $0x200] ss:$16 sps:$4 sm:$0xff]  }
 0x168   : > { %1608 = vmatpush2.bf16.msra.mxu0 %v4809_v29  ;;  %v3868_v29 = vld [vmem:[#allocation7 + $0xa4] ss:$16 sps:$4 sm:$0xff]  }
 0x169   : > { %1661 = vmatpush2.bf16.msra.mxu1 %v5227_v44  ;;  %1609 = vmatprep.subr.bf16.mxu0 %v5228_v46  ;;  %v3904_v44 = vld [vmem:[#allocation7 + $0x1e4] ss:$16 sps:$4 sm:$0xff]  }
 0x16a   : > { %1662 = vmatprep.subr.bf16.mxu1 %v4815_v5  ;;  %v3860_v5 = vld [vmem:[#allocation7 + $0xc0] ss:$16 sps:$4 sm:$0xff]   ;;  %v3907_v46 = vld [vmem:[#allocation7 + $0x3e4] ss:$16 sps:$4 sm:$0xff]  }
 0x16c   : > { %1610 = vmatpush2.bf16.msra.mxu0 %v4821_v10 }
 0x16d   : > { %1663 = vmatpush2.bf16.msra.mxu1 %v5229_v47  ;;  %1611 = vmatprep.subr.bf16.mxu0 %v5230_v3 }
 0x16e   : > { %1664 = vmatprep.subr.bf16.mxu1 %v5231_v4 }
 0x170   : > { %1612 = vmatpush2.bf16.msra.mxu0 %v5232_v9 }
 0x171   : > { %1665 = vmatpush2.bf16.msra.mxu1 %v5233_v21  ;;  %1613 = vmatprep.subr.bf16.mxu0 %v5234_v56  ;;  %v3902_v56 = vld [vmem:[#allocation7 + $0x1e0] ss:$16 sps:$4 sm:$0xff]  }
 0x172   : > { %1666 = vmatprep.subr.bf16.mxu1 %v4839_v20 }
 0x174   : > { %1614 = vmatpush2.bf16.msra.mxu0 %v4845_v6  ;;  %v3863_v6 = vld [vmem:[#allocation7 + $0x2c0] ss:$16 sps:$4 sm:$0xff]  }
 0x175   : > { %1667 = vmatpush2.bf16.msra.mxu1 %v5235_v1  ;;  %2329 = vmatprep.subr.bf16.mxu0 %v3856_v60  ;;  %v3905_v60 = vld [vmem:[#allocation7 + $0x3e0] ss:$16 sps:$4 sm:$0xff]   ;;  %v3910_v1 = vld [vmem:[#allocation7 + $0x1c4] ss:$16 sps:$4 sm:$0xff]  }
 0x176   : > { %2382 = vmatprep.subr.bf16.mxu1 %v3859_v62 }
 0x177   : > { %v1299_v52 = vpop.f32.mrf.mxu0  ;;  %1616 = vmatmul.mubr.bf16.vlgmr.msra.gmra.mxu0 %v4585_v12 }
 0x178   : > { %v1352_v55 = vpop.f32.mrf.mxu1  ;;  %1669 = vmatmul.mubr.bf16.vlgmr.msra.gmra.mxu1 %v4587_v13  ;;  %2330 = vmatpush1.bf16.msra.mxu0 %v3854_v50  ;;  %v3913_v50 = vld [vmem:[#allocation7 + $0x3c4] ss:$16 sps:$4 sm:$0xff]  }
 0x179   : > { %v4945_v2 = vadd.f32 %v1352_v55, %v1299_v52  ;;  %2383 = vmatpush1.bf16.msra.mxu1 %v3857_v48  ;;  %v1301_v10 = vpop.f32.mrf.mxu0  ;;  %2331 = vmatprep.subr.bf16.mxu0 %v3862_v49  ;;  %v3908_v52 = vld [vmem:[#allocation7 + $0x1c0] ss:$16 sps:$4 sm:$0xff]  }
 0x17a   : > { %v1354_v20 = vpop.f32.mrf.mxu1  ;;  %2384 = vmatprep.subr.bf16.mxu1 %v3865_v51  ;;  %1625 = vmatprep.mubr.bf16.mxu0 %v4690_v59  ;;  %v3911_v55 = vld [vmem:[#allocation7 + $0x3c0] ss:$16 sps:$4 sm:$0xff]  }
 0x17b   : > { %v4947_v61 = vadd.f32 %v1354_v20, %v1301_v10  ;;  %1678 = vmatprep.mubr.bf16.mxu1 %v4695_v63  ;;  %v1303_v28 = vpop.f32.mrf.mxu0  ;;  %v3914_v10 = vld [vmem:[#allocation7 + $0x1a0] ss:$16 sps:$4 sm:$0xff]  }
 0x17c   : > { %v1356_v18 = vpop.f32.mrf.mxu1  ;;  %2332 = vmatpush1.bf16.msra.mxu0 %v3860_v5  ;;  %v3916_v5 = vld [vmem:[#allocation7 + $0x1a4] ss:$16 sps:$4 sm:$0xff]   ;;  %v3917_v20 = vld [vmem:[#allocation7 + $0x3a0] ss:$16 sps:$4 sm:$0xff]  }
 0x17d   : > { %v4951_v19 = vadd.f32 %v1356_v18, %v1303_v28  ;;  %2385 = vmatpush1.bf16.msra.mxu1 %v3863_v6  ;;  %v1305_v11 = vpop.f32.mrf.mxu0  ;;  %2333 = vmatprep.subr.bf16.mxu0 %v3868_v29  ;;  %v3919_v6 = vld [vmem:[#allocation7 + $0x3a4] ss:$16 sps:$4 sm:$0xff]   ;;  %v3920_v28 = vld [vmem:[#allocation7 + $0x180] ss:$16 sps:$4 sm:$0xff]  }
 0x17e   : > { %v1358_v26 = vpop.f32.mrf.mxu1  ;;  %2386 = vmatprep.subr.bf16.mxu1 %v3871_v58  ;;  %v3922_v29 = vld [vmem:[#allocation7 + $0x184] ss:$16 sps:$4 sm:$0xff]   ;;  %v3923_v18 = vld [vmem:[#allocation7 + $0x380] ss:$16 sps:$4 sm:$0xff]  }
 0x17f   : > { %v4953_v8 = vadd.f32 %v1358_v26, %v1305_v11  ;;  %1626 = vmatmul.mubr.bf16.gmra.mxu0 %v4697_v0  ;;  %v3925_v58 = vld [vmem:[#allocation7 + $0x384] ss:$16 sps:$4 sm:$0xff]   ;;  %v3926_v11 = vld [vmem:[#allocation7 + $0x160] ss:$16 sps:$4 sm:$0xff]  }
 0x180   : > { %1679 = vmatmul.mubr.bf16.gmra.mxu1 %v4707_v7  ;;  %2334 = vmatpush1.bf16.msra.mxu0 %v3866_v32  ;;  %v3928_v32 = vld [vmem:[#allocation7 + $0x164] ss:$16 sps:$4 sm:$0xff]   ;;  %v3929_v26 = vld [vmem:[#allocation7 + $0x360] ss:$16 sps:$4 sm:$0xff]  }
 0x181   : > { %2387 = vmatpush1.bf16.msra.mxu1 %v3869_v33  ;;  %2335 = vmatprep.subr.bf16.mxu0 %v3874_v45  ;;  %v3931_v33 = vld [vmem:[#allocation7 + $0x364] ss:$16 sps:$4 sm:$0xff]  }
 0x182   : > { %2388 = vmatprep.subr.bf16.mxu1 %v3877_v57  ;;  %2361 = vmatprep.mubr.bf16.mxu0 %v4569_v53  ;;  %v3934_v45 = vld [vmem:[#allocation7 + $0x144] ss:$16 sps:$4 sm:$0xff]  }
 0x183   : > { %2414 = vmatprep.mubr.bf16.mxu1 %v4571_v54  ;;  %v3937_v57 = vld [vmem:[#allocation7 + $0x344] ss:$16 sps:$4 sm:$0xff]  }
 0x184   : > { %2336 = vmatpush1.bf16.msra.mxu0 %v3872_v27  ;;  %v3932_v27 = vld [vmem:[#allocation7 + $0x140] ss:$16 sps:$4 sm:$0xff]  }
 0x185   : > { %2389 = vmatpush1.bf16.msra.mxu1 %v3875_v14  ;;  %2337 = vmatprep.subr.bf16.mxu0 %v3880_v15  ;;  %v3935_v14 = vld [vmem:[#allocation7 + $0x340] ss:$16 sps:$4 sm:$0xff]   ;;  %v3940_v15 = vld [vmem:[#allocation7 + $0x124] ss:$16 sps:$4 sm:$0xff]  }
 0x186   : > { %2390 = vmatprep.subr.bf16.mxu1 %v3883_v16  ;;  %v3943_v16 = vld [vmem:[#allocation7 + $0x324] ss:$16 sps:$4 sm:$0xff]  }
 0x188   : > { %2338 = vmatpush1.bf16.msra.mxu0 %v3878_v17  ;;  %v3938_v17 = vld [vmem:[#allocation7 + $0x120] ss:$16 sps:$4 sm:$0xff]  }
 0x189   : > { %2391 = vmatpush1.bf16.msra.mxu1 %v3881_v22  ;;  %2339 = vmatprep.subr.bf16.mxu0 %v3886_v23  ;;  %v3941_v22 = vld [vmem:[#allocation7 + $0x320] ss:$16 sps:$4 sm:$0xff]   ;;  %v3946_v23 = vld [vmem:[#allocation7 + $0x104] ss:$16 sps:$4 sm:$0xff]  }
 0x18a   : > { %2392 = vmatprep.subr.bf16.mxu1 %v3889_v24  ;;  %v3949_v24 = vld [vmem:[#allocation7 + $0x304] ss:$16 sps:$4 sm:$0xff]  }
 0x18b   : > { %v1309_v39 = vpop.f32.mrf.mxu0 }
 0x18c   : > { %2340 = vmatpush1.bf16.msra.mxu0 %v3884_v25  ;;  %v3944_v25 = vld [vmem:[#allocation7 + $0x100] ss:$16 sps:$4 sm:$0xff]  }
 0x18d   : > { %2393 = vmatpush1.bf16.msra.mxu1 %v3887_v30  ;;  %2341 = vmatprep.subr.bf16.mxu0 %v3892_v31  ;;  %v1311_v47 = vpop.f32.mrf.mxu0  ;;  %v3947_v30 = vld [vmem:[#allocation7 + $0x300] ss:$16 sps:$4 sm:$0xff]   ;;  %v3952_v31 = vld [vmem:[#allocation7 + $0xec] ss:$16 sps:$4 sm:$0xff]  }
 0x18e   : > { %2394 = vmatprep.subr.bf16.mxu1 %v3895_v34  ;;  %v3955_v34 = vld [vmem:[#allocation7 + $0x2ec] ss:$16 sps:$4 sm:$0xff]  }
 0x18f   : > { %v1362_v40 = vpop.f32.mrf.mxu1  ;;  %v1313_v9 = vpop.f32.mrf.mxu0 }
 0x190   : > { %2342 = vmatpush1.bf16.msra.mxu0 %v3890_v35  ;;  %v4959_v43 = vadd.f32 %v1362_v40, %v1309_v39  ;;  %v3950_v35 = vld [vmem:[#allocation7 + $0xe8] ss:$16 sps:$4 sm:$0xff]  }
 0x191   : > { %2395 = vmatpush1.bf16.msra.mxu1 %v3893_v36  ;;  %2343 = vmatprep.subr.bf16.mxu0 %v3898_v37  ;;  %v1364_v3 = vpop.f32.mrf.mxu1  ;;  %v1315_v48 = vpop.f32.mrf.mxu0  ;;  %v3953_v36 = vld [vmem:[#allocation7 + $0x2e8] ss:$16 sps:$4 sm:$0xff]   ;;  %v3958_v37 = vld [vmem:[#allocation7 + $0xcc] ss:$16 sps:$4 sm:$0xff]  }
 0x192   : > { %2396 = vmatprep.subr.bf16.mxu1 %v3901_v38  ;;  %v4961_v4 = vadd.f32 %v1364_v3, %v1311_v47  ;;  %v3961_v38 = vld [vmem:[#allocation7 + $0x2cc] ss:$16 sps:$4 sm:$0xff]  }
 0x193   : > { %v1366_v21 = vpop.f32.mrf.mxu1  ;;  %v3964_v3 = vld [vmem:[#allocation7 + $0xac] ss:$16 sps:$4 sm:$0xff]  }
 0x194   : > { %2344 = vmatpush1.bf16.msra.mxu0 %v3896_v41  ;;  %v4963_v62 = vadd.f32 %v1366_v21, %v1313_v9  ;;  %v3967_v9 = vld [vmem:[#allocation7 + $0x2ac] ss:$16 sps:$4 sm:$0xff]  }
 0x195   : > { %2397 = vmatpush1.bf16.msra.mxu1 %v3899_v42  ;;  %2345 = vmatprep.subr.bf16.mxu0 %v3904_v44  ;;  %v1368_v49 = vpop.f32.mrf.mxu1  ;;  %v3956_v42 = vld [vmem:[#allocation7 + $0xc8] ss:$16 sps:$4 sm:$0xff]  }
 0x196   : > { %2398 = vmatprep.subr.bf16.mxu1 %v3907_v46  ;;  %v4965_v51 = vadd.f32 %v1368_v49, %v1315_v48  ;;  %v3959_v44 = vld [vmem:[#allocation7 + $0x2c8] ss:$16 sps:$4 sm:$0xff]  }
 0x198   : > { %2346 = vmatpush2.bf16.msra.mxu0 %v3902_v56 }
 0x199   : > { %2399 = vmatpush2.bf16.msra.mxu1 %v3905_v60  ;;  %2347 = vmatprep.subr.bf16.mxu0 %v3910_v1  ;;  %v3962_v1 = vld [vmem:[#allocation7 + $0xa8] ss:$16 sps:$4 sm:$0xff]  }
 0x19a   : > { %2400 = vmatprep.subr.bf16.mxu1 %v3913_v50  ;;  %v3965_v50 = vld [vmem:[#allocation7 + $0x2a8] ss:$16 sps:$4 sm:$0xff]  }
 0x19c   : > { %2348 = vmatpush2.bf16.msra.mxu0 %v3908_v52  ;;  %v3970_v52 = vld [vmem:[#allocation7 + $0x8c] ss:$16 sps:$4 sm:$0xff]  }
 0x19d   : > { %2401 = vmatpush2.bf16.msra.mxu1 %v3911_v55  ;;  %2349 = vmatprep.subr.bf16.mxu0 %v3916_v5  ;;  %v3973_v55 = vld [vmem:[#allocation7 + $0x28c] ss:$16 sps:$4 sm:$0xff]  }
 0x19e   : > { %2402 = vmatprep.subr.bf16.mxu1 %v3919_v6 }
 0x1a0   : > { %2350 = vmatpush2.bf16.msra.mxu0 %v3914_v10  ;;  %v3968_v10 = vld [vmem:[#allocation7 + $0x88] ss:$16 sps:$4 sm:$0xff]  }
 0x1a1   : > { %2403 = vmatpush2.bf16.msra.mxu1 %v3917_v20  ;;  %2351 = vmatprep.subr.bf16.mxu0 %v3922_v29  ;;  %v3971_v20 = vld [vmem:[#allocation7 + $0x288] ss:$16 sps:$4 sm:$0xff]  }
 0x1a2   : > { %2404 = vmatprep.subr.bf16.mxu1 %v3925_v58  ;;  %v3976_v58 = vld [vmem:[#allocation7 + $0x6c] ss:$16 sps:$4 sm:$0xff]  }
 0x1a4   : > { %2352 = vmatpush2.bf16.msra.mxu0 %v3920_v28  ;;  %v3979_v28 = vld [vmem:[#allocation7 + $0x26c] ss:$16 sps:$4 sm:$0xff]  }
 0x1a5   : > { %2405 = vmatpush2.bf16.msra.mxu1 %v3923_v18  ;;  %2353 = vmatprep.subr.bf16.mxu0 %v3928_v32 }
 0x1a6   : > { %2406 = vmatprep.subr.bf16.mxu1 %v3931_v33 }
 0x1a8   : > { %2354 = vmatpush2.bf16.msra.mxu0 %v3926_v11 }
 0x1a9   : > { %2407 = vmatpush2.bf16.msra.mxu1 %v3929_v26  ;;  %2355 = vmatprep.subr.bf16.mxu0 %v3934_v45  ;;  %v3974_v45 = vld [vmem:[#allocation7 + $0x68] ss:$16 sps:$4 sm:$0xff]  }
 0x1aa   : > { %2408 = vmatprep.subr.bf16.mxu1 %v3937_v57  ;;  %v3977_v57 = vld [vmem:[#allocation7 + $0x268] ss:$16 sps:$4 sm:$0xff]  }
 0x1ac   : > { %2356 = vmatpush2.bf16.msra.mxu0 %v3932_v27 }
 0x1ad   : > { %2409 = vmatpush2.bf16.msra.mxu1 %v3935_v14  ;;  %2357 = vmatprep.subr.bf16.mxu0 %v3940_v15  ;;  %v3982_v14 = vld [vmem:[#allocation7 + $0x4c] ss:$16 sps:$4 sm:$0xff]  }
 0x1ae   : > { %2410 = vmatprep.subr.bf16.mxu1 %v3943_v16  ;;  %v3985_v15 = vld [vmem:[#allocation7 + $0x24c] ss:$16 sps:$4 sm:$0xff]   ;;  %v3980_v16 = vld [vmem:[#allocation7 + $0x48] ss:$16 sps:$4 sm:$0xff]  }
 0x1b0   : > { %2358 = vmatpush2.bf16.msra.mxu0 %v3938_v17  ;;  %v3983_v17 = vld [vmem:[#allocation7 + $0x248] ss:$16 sps:$4 sm:$0xff]  }
 0x1b1   : > { %2411 = vmatpush2.bf16.msra.mxu1 %v3941_v22  ;;  %2359 = vmatprep.subr.bf16.mxu0 %v3946_v23  ;;  %v3986_v22 = vld [vmem:[#allocation7 + $0x28] ss:$16 sps:$4 sm:$0xff]  }
 0x1b2   : > { %2412 = vmatprep.subr.bf16.mxu1 %v3949_v24  ;;  %v3989_v23 = vld [vmem:[#allocation7 + $0x228] ss:$16 sps:$4 sm:$0xff]   ;;  %v3994_v24 = vld [vmem:[#allocation7 + $0xc] ss:$16 sps:$4 sm:$0xff]  }
 0x1b4   : > { %2360 = vmatpush2.bf16.msra.mxu0 %v3944_v25  ;;  %v3997_v25 = vld [vmem:[#allocation7 + $0x20c] ss:$16 sps:$4 sm:$0xff]  }
 0x1b5   : > { %2413 = vmatpush2.bf16.msra.mxu1 %v3947_v30  ;;  %2435 = vmatprep.subr.bf16.mxu0 %v3952_v31  ;;  %v3992_v30 = vld [vmem:[#allocation7 + $0x8] ss:$16 sps:$4 sm:$0xff]  }
 0x1b6   : > { %2488 = vmatprep.subr.bf16.mxu1 %v3955_v34  ;;  %v3995_v31 = vld [vmem:[#allocation7 + $0x208] ss:$16 sps:$4 sm:$0xff]   ;;  %v4000_v34 = vld [vmem:[#allocation7 + $0x1ec] ss:$16 sps:$4 sm:$0xff]  }
 0x1b7   : > { %v1405_v39 = vpop.f32.mrf.mxu0  ;;  %2362 = vmatmul.mubr.bf16.vlgmr.msra.gmra.mxu0 %v4585_v12 }
 0x1b8   : > { %v1458_v40 = vpop.f32.mrf.mxu1  ;;  %2415 = vmatmul.mubr.bf16.vlgmr.msra.gmra.mxu1 %v4587_v13  ;;  %2436 = vmatpush1.bf16.msra.mxu0 %v3950_v35  ;;  %v4003_v35 = vld [vmem:[#allocation7 + $0x3ec] ss:$16 sps:$4 sm:$0xff]  }
 0x1b9   : > { %v4969_v41 = vadd.f32 %v1458_v40, %v1405_v39  ;;  %2489 = vmatpush1.bf16.msra.mxu1 %v3953_v36  ;;  %v1407_v46 = vpop.f32.mrf.mxu0  ;;  %2437 = vmatprep.subr.bf16.mxu0 %v3958_v37  ;;  %v3998_v36 = vld [vmem:[#allocation7 + $0x1e8] ss:$16 sps:$4 sm:$0xff]   ;;  %v4009_v39 = vld [vmem:[#allocation7 + $0x3cc] ss:$16 sps:$4 sm:$0xff]  }
 0x1ba   : > { %v1460_v47 = vpop.f32.mrf.mxu1  ;;  %2490 = vmatprep.subr.bf16.mxu1 %v3961_v38  ;;  %2371 = vmatprep.mubr.bf16.mxu0 %v4690_v59  ;;  %v4001_v37 = vld [vmem:[#allocation7 + $0x3e8] ss:$16 sps:$4 sm:$0xff]   ;;  %v4006_v38 = vld [vmem:[#allocation7 + $0x1cc] ss:$16 sps:$4 sm:$0xff]  }
 0x1bb   : > { %v4971_v21 = vadd.f32 %v1460_v47, %v1407_v46  ;;  %2424 = vmatprep.mubr.bf16.mxu1 %v4695_v63  ;;  %v4975_v56 = vpop.f32.mrf.mxu0  ;;  %v4004_v40 = vld [vmem:[#allocation7 + $0x1c8] ss:$16 sps:$4 sm:$0xff]   ;;  %v4015_v46 = vld [vmem:[#allocation7 + $0x3ac] ss:$16 sps:$4 sm:$0xff]  }
 0x1bc   : > { %v4977_v60 = vpop.f32.mrf.mxu1  ;;  %2438 = vmatpush1.bf16.msra.mxu0 %v3956_v42  ;;  %v4007_v42 = vld [vmem:[#allocation7 + $0x3c8] ss:$16 sps:$4 sm:$0xff]  }
 0x1bd   : > { %2491 = vmatpush1.bf16.msra.mxu1 %v3959_v44  ;;  %v4979_v48 = vpop.f32.mrf.mxu0  ;;  %2439 = vmatprep.subr.bf16.mxu0 %v3964_v3  ;;  %v4012_v44 = vld [vmem:[#allocation7 + $0x1ac] ss:$16 sps:$4 sm:$0xff]   ;;  %v4010_v47 = vld [vmem:[#allocation7 + $0x1a8] ss:$16 sps:$4 sm:$0xff]  }
 0x1be   : > { %v4981_v49 = vpop.f32.mrf.mxu1  ;;  %2492 = vmatprep.subr.bf16.mxu1 %v3967_v9  ;;  %v4013_v3 = vld [vmem:[#allocation7 + $0x3a8] ss:$16 sps:$4 sm:$0xff]   ;;  %v4018_v9 = vld [vmem:[#allocation7 + $0x18c] ss:$16 sps:$4 sm:$0xff]  }
 0x1bf   : > { %2372 = vmatmul.mubr.bf16.gmra.mxu0 %v4697_v0  ;;  %v1415_v5 = vpop.f32.mrf.mxu0 }
 0x1c0   : > { %2425 = vmatmul.mubr.bf16.gmra.mxu1 %v4707_v7  ;;  %v1468_v6 = vpop.f32.mrf.mxu1  ;;  %2440 = vmatpush1.bf16.msra.mxu0 %v3962_v1  ;;  %v4021_v1 = vld [vmem:[#allocation7 + $0x38c] ss:$16 sps:$4 sm:$0xff]  }
 0x1c1   : > { %2493 = vmatpush1.bf16.msra.mxu1 %v3965_v50  ;;  %v4985_v29 = vadd.f32 %v1468_v6, %v1415_v5  ;;  %2441 = vmatprep.subr.bf16.mxu0 %v3970_v52  ;;  %v1417_v18 = vpop.f32.mrf.mxu0  ;;  %v4016_v50 = vld [vmem:[#allocation7 + $0x188] ss:$16 sps:$4 sm:$0xff]   ;;  %v4027_v5 = vld [vmem:[#allocation7 + $0x36c] ss:$16 sps:$4 sm:$0xff]  }
 0x1c2   : > { %2494 = vmatprep.subr.bf16.mxu1 %v3973_v55  ;;  %v1470_v32 = vpop.f32.mrf.mxu1  ;;  %2467 = vmatprep.mubr.bf16.mxu0 %v4569_v53  ;;  %v3988_v53 = vld [vmem:[#allocation7 + $0x2c] ss:$16 sps:$4 sm:$0xff]   ;;  %v4019_v52 = vld [vmem:[#allocation7 + $0x388] ss:$16 sps:$4 sm:$0xff]  }
 0x1c3   : > { %v4987_v33 = vadd.f32 %v1470_v32, %v1417_v18  ;;  %2520 = vmatprep.mubr.bf16.mxu1 %v4571_v54  ;;  %v1419_v11 = vpop.f32.mrf.mxu0  ;;  %v3991_v54 = vld [vmem:[#allocation7 + $0x22c] ss:$16 sps:$4 sm:$0xff]   ;;  %v4022_v6 = vld [vmem:[#allocation7 + $0x168] ss:$16 sps:$4 sm:$0xff]  }
 0x1c4   : > { %v1472_v26 = vpop.f32.mrf.mxu1  ;;  %2442 = vmatpush1.bf16.msra.mxu0 %v3968_v10  ;;  %v4024_v55 = vld [vmem:[#allocation7 + $0x16c] ss:$16 sps:$4 sm:$0xff]   ;;  %v4025_v10 = vld [vmem:[#allocation7 + $0x368] ss:$16 sps:$4 sm:$0xff]  }
 0x1c5   : > { %2495 = vmatpush1.bf16.msra.mxu1 %v3971_v20  ;;  %v4991_v27 = vadd.f32 %v1472_v26, %v1419_v11  ;;  %2443 = vmatprep.subr.bf16.mxu0 %v3976_v58  ;;  %v4030_v20 = vld [vmem:[#allocation7 + $0x14c] ss:$16 sps:$4 sm:$0xff]   ;;  %v4031_v18 = vld [vmem:[#allocation7 + $0x348] ss:$16 sps:$4 sm:$0xff]  }
 0x1c6   : > { %2496 = vmatprep.subr.bf16.mxu1 %v3979_v28  ;;  %v4033_v58 = vld [vmem:[#allocation7 + $0x34c] ss:$16 sps:$4 sm:$0xff]   ;;  %v4028_v28 = vld [vmem:[#allocation7 + $0x148] ss:$16 sps:$4 sm:$0xff]  }
 0x1c7   : > { %5236 = vst [vmem:[#allocation16_spill] sm:$0xff] %v4991_v27  ;;  %v4036_v32 = vld [vmem:[#allocation7 + $0x12c] ss:$16 sps:$4 sm:$0xff]   ;;  %v4034_v26 = vld [vmem:[#allocation7 + $0x128] ss:$16 sps:$4 sm:$0xff]  }
 0x1c8   : > { %2444 = vmatpush1.bf16.msra.mxu0 %v3974_v45  ;;  %v4039_v11 = vld [vmem:[#allocation7 + $0x32c] ss:$16 sps:$4 sm:$0xff]   ;;  %v4037_v45 = vld [vmem:[#allocation7 + $0x328] ss:$16 sps:$4 sm:$0xff]  }
 0x1c9   : > { %2497 = vmatpush1.bf16.msra.mxu1 %v3977_v57  ;;  %2445 = vmatprep.subr.bf16.mxu0 %v3982_v14  ;;  %v4042_v57 = vld [vmem:[#allocation7 + $0x10c] ss:$16 sps:$4 sm:$0xff]  }
 0x1ca   : > { %2498 = vmatprep.subr.bf16.mxu1 %v3985_v15  ;;  %v4045_v14 = vld [vmem:[#allocation7 + $0x30c] ss:$16 sps:$4 sm:$0xff]   ;;  %v4040_v15 = vld [vmem:[#allocation7 + $0x108] ss:$16 sps:$4 sm:$0xff]  }
 0x1cc   : > { %2446 = vmatpush1.bf16.msra.mxu0 %v3980_v16  ;;  %v4043_v16 = vld [vmem:[#allocation7 + $0x308] ss:$16 sps:$4 sm:$0xff]  }
 0x1cd   : > { %2499 = vmatpush1.bf16.msra.mxu1 %v3983_v17  ;;  %2447 = vmatprep.subr.bf16.mxu0 %v3988_v53  ;;  %v4046_v17 = vld [vmem:[#allocation8 + $0x78] sm:$0xff]  }
 0x1ce   : > { %2500 = vmatprep.subr.bf16.mxu1 %v3991_v54  ;;  %v4047_v53 = vld [vmem:[#allocation8 + $0x38] sm:$0xff]   ;;  %v4048_v54 = vld [vmem:[#allocation8 + $0x70] sm:$0xff]  }
 0x1d0   : > { %2448 = vmatpush1.bf16.msra.mxu0 %v3986_v22  ;;  %v4049_v22 = vld [vmem:[#allocation8 + $0x30] sm:$0xff]  }
 0x1d1   : > { %2501 = vmatpush1.bf16.msra.mxu1 %v3989_v23  ;;  %2449 = vmatprep.subr.bf16.mxu0 %v3994_v24  ;;  %v4056_v23 = vld [vmem:[#allocation8 + $0x50] sm:$0xff]  }
 0x1d2   : > { %2502 = vmatprep.subr.bf16.mxu1 %v3997_v25  ;;  %v4057_v24 = vld [vmem:[#allocation8 + $0x10] sm:$0xff]   ;;  %v4058_v25 = vld [vmem:[#allocation8 + $0x48] sm:$0xff]  }
 0x1d4   : > { %2450 = vmatpush1.bf16.msra.mxu0 %v3992_v30  ;;  %v4059_v30 = vld [vmem:[#allocation8 + $0x8] sm:$0xff]  }
 0x1d5   : > { %2503 = vmatpush1.bf16.msra.mxu1 %v3995_v31  ;;  %2451 = vmatprep.subr.bf16.mxu0 %v4000_v34  ;;  %v4060_v31 = vld [vmem:[#allocation8 + $0x40] sm:$0xff]  }
 0x1d6   : > { %2504 = vmatprep.subr.bf16.mxu1 %v4003_v35  ;;  %v4061_v34 = vld [vmem:[#allocation8] sm:$0xff]   ;;  %v4062_v35 = vld [vmem:[#allocation10 + $0x78] sm:$0xff]  }
 0x1d8   : > { %2452 = vmatpush2.bf16.msra.mxu0 %v3998_v36  ;;  %v1421_v36 = vpop.f32.mrf.mxu0 }
 0x1d9   : > { %2505 = vmatpush2.bf16.msra.mxu1 %v4001_v37  ;;  %2453 = vmatprep.subr.bf16.mxu0 %v4006_v38  ;;  %v1474_v38 = vpop.f32.mrf.mxu1 }
 0x1da   : > { %2506 = vmatprep.subr.bf16.mxu1 %v4009_v39 }
 0x1dc   : > { %2454 = vmatpush2.bf16.msra.mxu0 %v4004_v40 }
 0x1dd   : > { %2507 = vmatpush2.bf16.msra.mxu1 %v4007_v42  ;;  %2455 = vmatprep.subr.bf16.mxu0 %v4012_v44 }
 0x1de   : > { %2508 = vmatprep.subr.bf16.mxu1 %v4015_v46 }
 0x1e0   : > { %2456 = vmatpush2.bf16.msra.mxu0 %v4010_v47 }
 0x1e1   : > { %2509 = vmatpush2.bf16.msra.mxu1 %v4013_v3  ;;  %2457 = vmatprep.subr.bf16.mxu0 %v4018_v9 }
 0x1e2   : > { %2510 = vmatprep.subr.bf16.mxu1 %v4021_v1 }
 0x1e4   : > { %2458 = vmatpush2.bf16.msra.mxu0 %v4016_v50 }
 0x1e5   : > { %2511 = vmatpush2.bf16.msra.mxu1 %v4019_v52  ;;  %2459 = vmatprep.subr.bf16.mxu0 %v4024_v55 }
 0x1e6   : > { %2512 = vmatprep.subr.bf16.mxu1 %v4027_v5 }
 0x1e8   : > { %2460 = vmatpush2.bf16.msra.mxu0 %v4022_v6 }
 0x1e9   : > { %2513 = vmatpush2.bf16.msra.mxu1 %v4025_v10  ;;  %2461 = vmatprep.subr.bf16.mxu0 %v4030_v20 }
 0x1ea   : > { %2514 = vmatprep.subr.bf16.mxu1 %v4033_v58 }
 0x1ec   : > { %2462 = vmatpush2.bf16.msra.mxu0 %v4028_v28 }
 0x1ed   : > { %2515 = vmatpush2.bf16.msra.mxu1 %v4031_v18  ;;  %2463 = vmatprep.subr.bf16.mxu0 %v4036_v32 }
 0x1ee   : > { %2516 = vmatprep.subr.bf16.mxu1 %v4039_v11 }
 0x1f0   : > { %2464 = vmatpush2.bf16.msra.mxu0 %v4034_v26 }
 0x1f1   : > { %2517 = vmatpush2.bf16.msra.mxu1 %v4037_v45  ;;  %2465 = vmatprep.subr.bf16.mxu0 %v4042_v57 }
 0x1f2   : > { %2518 = vmatprep.subr.bf16.mxu1 %v4045_v14 }
 0x1f4   : > { %2466 = vmatpush2.bf16.msra.mxu0 %v4040_v15 }
 0x1f5   : > { %2519 = vmatpush2.bf16.msra.mxu1 %v4043_v16  ;;  %3467 = vmatprep.subr.bf16.mxu0 %v4046_v17 }
 0x1f6   : > { %3495 = vmatprep.subr.bf16.mxu1 %v4046_v17 }
 0x1f7   : > { %2468 = vmatmul.mubr.bf16.vlgmr.msra.gmra.mxu0 %v4585_v12  ;;  %v4050_v12 = vld [vmem:[#allocation8 + $0x68] sm:$0xff]   ;;  %v1511_v37 = vpop.f32.mrf.mxu0 }
 0x1f8   : > { %2521 = vmatmul.mubr.bf16.vlgmr.msra.gmra.mxu1 %v4587_v13  ;;  %2477 = vmatprep.mubr.bf16.mxu0 %v4690_v59  ;;  %v4051_v13 = vld [vmem:[#allocation8 + $0x28] sm:$0xff]   ;;  %v4052_v59 = vld [vmem:[#allocation8 + $0x60] sm:$0xff]   ;;  %v1564_v39 = vpop.f32.mrf.mxu1 }
 0x1f9   : > { %2530 = vmatprep.mubr.bf16.mxu1 %v4695_v63  ;;  %3496 = vmatpush3.bf16.msra.mxu1 %v4047_v53  ;;  %v4053_v63 = vld [vmem:[#allocation8 + $0x20] sm:$0xff]   ;;  %v1513_v40 = vpop.f32.mrf.mxu0 }
 0x1fa   : > { %3468 = vmatpush3.bf16.msra.mxu0 %v4047_v53  ;;  %3497 = vmatprep.subr.bf16.mxu1 %v4048_v54  ;;  %v1566_v42 = vpop.f32.mrf.mxu1 }
 0x1fb   : > { %3469 = vmatprep.subr.bf16.mxu0 %v4048_v54  ;;  %v1515_v44 = vpop.f32.mrf.mxu0 }
 0x1fc   : > { %v1568_v46 = vpop.f32.mrf.mxu1 }
 0x1fd   : > { %3498 = vmatpush3.bf16.msra.mxu1 %v4049_v22  ;;  %v1517_v47 = vpop.f32.mrf.mxu0 }
 0x1fe   : > { %3470 = vmatpush3.bf16.msra.mxu0 %v4049_v22  ;;  %3499 = vmatprep.subr.bf16.mxu1 %v4050_v12  ;;  %v1570_v3 = vpop.f32.mrf.mxu1 }
 0x1ff   : > { %2478 = vmatmul.mubr.bf16.gmra.mxu0 %v4697_v0  ;;  %3471 = vmatprep.subr.bf16.mxu0 %v4050_v12  ;;  %v4054_v0 = vld [vmem:[#allocation8 + $0x58] sm:$0xff]   ;;  %v1521_v9 = vpop.f32.mrf.mxu0 }
 0x200   : > { %2531 = vmatmul.mubr.bf16.gmra.mxu1 %v4707_v7  ;;  %v4055_v7 = vld [vmem:[#allocation8 + $0x18] sm:$0xff]   ;;  %v1574_v1 = vpop.f32.mrf.mxu1  ;;  %v1522_v27 = vadd.f32 %v1521_v9, %v4959_v43 }
 0x201   : > { %3500 = vmatpush3.bf16.msra.mxu1 %v4051_v13  ;;  %v1523_v50 = vpop.f32.mrf.mxu0 }
 0x202   : > { %3472 = vmatpush3.bf16.msra.mxu0 %v4051_v13  ;;  %3501 = vmatprep.subr.bf16.mxu1 %v4052_v59  ;;  %v1576_v52 = vpop.f32.mrf.mxu1 }
 0x203   : > { %3473 = vmatprep.subr.bf16.mxu0 %v4052_v59  ;;  %v1525_v55 = vpop.f32.mrf.mxu0 }
 0x204   : > { %v4999_v5 = vpop.f32.mrf.mxu1 }
 0x205   : > { %3502 = vmatpush3.bf16.msra.mxu1 %v4053_v63  ;;  %v1527_v6 = vpop.f32.mrf.mxu0 }
 0x206   : > { %3474 = vmatpush3.bf16.msra.mxu0 %v4053_v63  ;;  %3503 = vmatprep.subr.bf16.mxu1 %v4054_v0  ;;  %v5001_v10 = vpop.f32.mrf.mxu1 }
 0x207   : > { %3475 = vmatprep.subr.bf16.mxu0 %v4054_v0  ;;  %5237 = vst [vmem:[#allocation17_spill] sm:$0xff] %v5001_v10 }
 0x209   : > { %3504 = vmatpush3.bf16.msra.mxu1 %v4055_v7 }
 0x20a   : > { %3476 = vmatpush3.bf16.msra.mxu0 %v4055_v7  ;;  %3505 = vmatprep.subr.bf16.mxu1 %v4056_v23 }
 0x20b   : > { %3477 = vmatprep.subr.bf16.mxu0 %v4056_v23 }
 0x20d   : > { %3506 = vmatpush3.bf16.msra.mxu1 %v4057_v24 }
 0x20e   : > { %3478 = vmatpush3.bf16.msra.mxu0 %v4057_v24  ;;  %3507 = vmatprep.subr.bf16.mxu1 %v4058_v25 }
 0x20f   : > { %3479 = vmatprep.subr.bf16.mxu0 %v4058_v25 }
 0x211   : > { %3508 = vmatpush3.bf16.msra.mxu1 %v4059_v30 }
 0x212   : > { %3480 = vmatpush3.bf16.msra.mxu0 %v4059_v30  ;;  %3509 = vmatprep.subr.bf16.mxu1 %v4060_v31 }
 0x213   : > { %3481 = vmatprep.subr.bf16.mxu0 %v4060_v31 }
 0x215   : > { %3510 = vmatpush3.bf16.msra.mxu1 %v4061_v34 }
 0x216   : > { %3482 = vmatpush3.bf16.msra.mxu0 %v4061_v34  ;;  %3551 = vmatprep.subr.bf16.mxu1 %v4062_v35 }
 0x217   : > { %3523 = vmatprep.subr.bf16.mxu0 %v4062_v35  ;;  %v1512_v35 = vadd.f32 %v1511_v37, %v4945_v2  ;;  %v1465_v2 = vadd.f32 %v4981_v49, %v4979_v48  ;;  %v5035_v37 = vadd.f32 %v1474_v38, %v1421_v36  ;;  %v1575_v48 = vadd.f32 %v1574_v1, %v1522_v27 }
 0x237   : > { %v1617_v20 = vpop.f32.mrf.mxu0 }
 0x238   : > { %v1670_v58 = vpop.f32.mrf.mxu1 }
 0x239   : > { %v1619_v28 = vpop.f32.mrf.mxu0 }
 0x23a   : > { %v5003_v18 = vpop.f32.mrf.mxu1 }
 0x23b   : > { %v1621_v32 = vpop.f32.mrf.mxu0 }
 0x23c   : > { %v5005_v11 = vpop.f32.mrf.mxu1 }
 0x23d   : > { %v1623_v26 = vpop.f32.mrf.mxu0 }
 0x23e   : > { %v5007_v45 = vpop.f32.mrf.mxu1  ;;  %v1624_v36 = vadd.f32 %v1623_v26, %v1465_v2 }
 0x23f   : > { %v1627_v57 = vpop.f32.mrf.mxu0 }
 0x240   : > { %v5009_v14 = vpop.f32.mrf.mxu1 }
 0x241   : > { %5238 = vst [vmem:[#allocation18_spill] sm:$0xff] %v5009_v14  ;;  %v1629_v15 = vpop.f32.mrf.mxu0  ;;  %v1524_v14 = vadd.f32 %v1523_v50, %v4961_v4  ;;  %v1620_v4 = vadd.f32 %v1619_v28, %v4971_v21 }
 0x242   : > { %v5011_v16 = vpop.f32.mrf.mxu1 }
 0x243   : > { %5239 = vst [vmem:[#allocation19_spill] sm:$0xff] %v5011_v16  ;;  %v5013_v17 = vpop.f32.mrf.mxu0  ;;  %v1518_v16 = vadd.f32 %v1517_v47, %v4953_v8  ;;  %v1577_v49 = vadd.f32 %v1576_v52, %v1524_v14  ;;  %v1673_v27 = vadd.f32 %v5003_v18, %v1620_v4 }
 0x244   : > { %5240 = vst [vmem:[#allocation20_spill] sm:$0xff] %v5013_v17  ;;  %v5015_v53 = vpop.f32.mrf.mxu1  ;;  %v1463_v17 = vadd.f32 %v4977_v60, %v4975_v56 }
 0x245   : > { %5241 = vst [vmem:[#allocation21_spill] sm:$0xff] %v5015_v53  ;;  %v5017_v54 = vpop.f32.mrf.mxu0  ;;  %v1514_v53 = vadd.f32 %v1513_v40, %v4947_v61  ;;  %v1618_v61 = vadd.f32 %v1617_v20, %v4969_v41  ;;  %v1571_v60 = vadd.f32 %v1570_v3, %v1518_v16  ;;  %v1628_v20 = vadd.f32 %v1627_v57, %v4985_v29 }
 0x246   : > { %5242 = vst [vmem:[#allocation22_spill] sm:$0xff] %v5017_v54  ;;  %v5019_v22 = vpop.f32.mrf.mxu1  ;;  %v1622_v47 = vadd.f32 %v1621_v32, %v1463_v17  ;;  %v1677_v32 = vadd.f32 %v5007_v45, %v1624_v36 }
 0x247   : > { %5243 = vst [vmem:[#allocation23_spill] sm:$0xff] %v5019_v22  ;;  %v1516_v22 = vadd.f32 %v1515_v44, %v4951_v19  ;;  %v1526_v19 = vadd.f32 %v1525_v55, %v4963_v62 }
 0x248   : > { %v1675_v1 = vadd.f32 %v5005_v11, %v1622_v47  ;;  %v5246_v17 = vld [vmem:[#allocation18_spill] sm:$0xff] }
 0x249   : > { %v1569_v43 = vadd.f32 %v1568_v46, %v1516_v22  ;;  %v1579_v55 = vadd.f32 %v4999_v5, %v1526_v19 }
 0x277   : > { %v2363_v12 = vpop.f32.mrf.mxu0 }
 0x278   : > { %v2416_v13 = vpop.f32.mrf.mxu1 }
 0x279   : > { %v2365_v59 = vpop.f32.mrf.mxu0  ;;  %v2417_v40 = vadd.f32 %v2416_v13, %v2363_v12 }
 0x27a   : > { %v2418_v63 = vpop.f32.mrf.mxu1 }
 0x27b   : > { %v2367_v0 = vpop.f32.mrf.mxu0  ;;  %v2419_v8 = vadd.f32 %v2418_v63, %v2365_v59 }
 0x27c   : > { %v2420_v7 = vpop.f32.mrf.mxu1 }
 0x27d   : > { %v2369_v23 = vpop.f32.mrf.mxu0  ;;  %v2421_v38 = vadd.f32 %v2420_v7, %v2367_v0  ;;  %v5249_v7 = vld [vmem:[#allocation19_spill] sm:$0xff] }
 0x27e   : > { %v2422_v24 = vpop.f32.mrf.mxu1 }
 0x27f   : > { %v2373_v25 = vpop.f32.mrf.mxu0  ;;  %v2423_v3 = vadd.f32 %v2422_v24, %v2369_v23 }
 0x280   : > { %v2426_v30 = vpop.f32.mrf.mxu1 }
 0x281   : > { %v2375_v31 = vpop.f32.mrf.mxu0  ;;  %v2546_v18 = vadd.f32 %v2423_v3, %v1571_v60 }
 0x282   : > { %v2428_v34 = vpop.f32.mrf.mxu1 }
 0x283   : > { %v5023_v10 = vpop.f32.mrf.mxu0  ;;  %v2429_v22 = vadd.f32 %v2428_v34, %v2375_v31  ;;  %v5250_v31 = vld [vmem:[#allocation22_spill] sm:$0xff] }
 0x284   : > { %5244 = vst [vmem:[#allocation24_spill] sm:$0xff] %v5023_v10  ;;  %v5025_v54 = vpop.f32.mrf.mxu1  ;;  %v1567_v10 = vadd.f32 %v1566_v42, %v1514_v53  ;;  %v1671_v42 = vadd.f32 %v1670_v58, %v1618_v61  ;;  %v2427_v58 = vadd.f32 %v2426_v30, %v2373_v25  ;;  %v1681_v53 = vadd.f32 %v5246_v17, %v1628_v20  ;;  %v5254_v20 = vld [vmem:[#allocation21_spill] sm:$0xff] }
 0x285   : > { %5245 = vst [vmem:[#allocation25_spill] sm:$0xff] %v5025_v54  ;;  %v1565_v54 = vadd.f32 %v1564_v39, %v1512_v35  ;;  %v5039_v44 = vpop.f32.mrf.mxu0  ;;  %v1528_v39 = vadd.f32 %v1527_v6, %v4965_v51  ;;  %v1630_v51 = vadd.f32 %v1629_v15, %v4987_v33  ;;  %v2545_v6 = vadd.f32 %v2421_v38, %v1569_v43  ;;  %v5247_v33 = vld [vmem:[#allocation16_spill] sm:$0xff] }
 0x286   : > { %v5041_v56 = vpop.f32.mrf.mxu1  ;;  %v2542_v46 = vadd.f32 %v2419_v8, %v1567_v10  ;;  %v5248_v15 = vld [vmem:[#allocation20_spill] sm:$0xff]  ;;  %v2549_v25 = vadd.f32 %v2427_v58, %v1575_v48  ;;  %v1634_v34 = vadd.f32 %v5250_v31, %v5035_v37  ;;  %v2560_v8 = vmul.f32 %v2546_v18, %v2546_v18 }
 0x287   : > { %v2541_v62 = vadd.f32 %v2417_v40, %v1565_v54  ;;  %v1632_v0 = vadd.f32 %v5248_v15, %v5247_v33  ;;  %v1683_v23 = vadd.f32 %v5249_v7, %v1630_v51  ;;  %v2559_v24 = vmul.f32 %v2545_v6, %v2545_v6  ;;  %v4065_v15 = vld [vmem:[#allocation10 + $0x30] sm:$0xff]  }
 0x288   : > { %v2558_v54 = vmul.f32 %v2542_v46, %v2542_v46  ;;  %v2550_v43 = vadd.f32 %v2429_v22, %v1577_v49  ;;  %v2561_v3 = vmul.f32 %v2549_v25, %v2549_v25  ;;  %v4066_v25 = vld [vmem:[#allocation10 + $0x68] sm:$0xff]  }
 0x289   : > { %v2557_v14 = vmul.f32 %v2541_v62, %v2541_v62  ;;  %v5253_v62 = vld [vmem:[#allocation17_spill] sm:$0xff]  ;;  %v1685_v46 = vadd.f32 %v5254_v20, %v1632_v0 }
 0x28a   : > { %v2562_v51 = vmul.f32 %v2550_v43, %v2550_v43  ;;  %v4074_v20 = vld [vmem:[#allocation10 + $0x48] sm:$0xff]  }
 0x28b   : > { %v5251_v60 = vld [vmem:[#allocation24_spill] sm:$0xff] }
 0x28c   : > { %v5252_v4 = vld [vmem:[#allocation25_spill] sm:$0xff] }
 0x28d   : > { %v2431_v47 = vadd.f32 %v5252_v4, %v5251_v60 }
 0x28f   : > { %v2553_v6 = vadd.f32 %v2431_v47, %v1579_v55  ;;  %v4069_v47 = vld [vmem:[#allocation10 + $0x20] sm:$0xff]  }
 0x2b7   : > { %v2469_v41 = vpop.f32.mrf.mxu0 }
 0x2b8   : > { %v2522_v9 = vpop.f32.mrf.mxu1 }
 0x2b9   : > { %v2523_v50 = vadd.f32 %v2522_v9, %v2469_v41  ;;  %v2471_v16 = vpop.f32.mrf.mxu0 }
 0x2ba   : > { %v2524_v21 = vpop.f32.mrf.mxu1 }
 0x2bb   : > { %v2543_v52 = vadd.f32 %v2523_v50, %v1671_v42  ;;  %v2525_v28 = vadd.f32 %v2524_v21, %v2471_v16  ;;  %v2473_v26 = vpop.f32.mrf.mxu0  ;;  %v1581_v50 = vadd.f32 %v5253_v62, %v1528_v39  ;;  %v2433_v16 = vadd.f32 %v5041_v56, %v5039_v44  ;;  %v4063_v56 = vld [vmem:[#allocation10 + $0x38] sm:$0xff]   ;;  %v4072_v62 = vld [vmem:[#allocation10 + $0x50] sm:$0xff]  }
 0x2bc   : > { %v2526_v5 = vpop.f32.mrf.mxu1 }
 0x2bd   : > { %v2565_v29 = vmul.f32 %v2543_v52, %v2543_v52  ;;  %v2544_v10 = vadd.f32 %v2525_v28, %v1673_v27  ;;  %v2527_v57 = vadd.f32 %v2526_v5, %v2473_v26  ;;  %v2475_v11 = vpop.f32.mrf.mxu0  ;;  %v5255_v28 = vld [vmem:[#allocation23_spill] sm:$0xff] }
 0x2be   : > { %v2528_v12 = vpop.f32.mrf.mxu1 }
 0x2bf   : > { %v2573_v13 = vadd.f32 %v2565_v29, %v2557_v14  ;;  %v2566_v59 = vmul.f32 %v2544_v10, %v2544_v10  ;;  %v2547_v45 = vadd.f32 %v2527_v57, %v1675_v1  ;;  %v2529_v63 = vadd.f32 %v2528_v12, %v2475_v11  ;;  %v2479_v30 = vpop.f32.mrf.mxu0 }
 0x2c0   : > { %v2532_v35 = vpop.f32.mrf.mxu1  ;;  %v2554_v10 = vadd.f32 %v2433_v16, %v1581_v50  ;;  %v2563_v12 = vmul.f32 %v2553_v6, %v2553_v6  ;;  %v4073_v50 = vld [vmem:[#allocation10 + $0x10] sm:$0xff]   ;;  %v4077_v16 = vld [vmem:[#allocation10] sm:$0xff]  }
 0x2c1   : > { %v2574_v2 = vadd.f32 %v2566_v59, %v2558_v54  ;;  %v2567_v61 = vmul.f32 %v2547_v45, %v2547_v45  ;;  %v2548_v40 = vadd.f32 %v2529_v63, %v1677_v32  ;;  %v2533_v19 = vadd.f32 %v2532_v35, %v2479_v30  ;;  %v2481_v36 = vpop.f32.mrf.mxu0  ;;  %v4064_v54 = vld [vmem:[#allocation10 + $0x70] sm:$0xff]  }
 0x2c2   : > { %v2534_v38 = vpop.f32.mrf.mxu1  ;;  %v1687_v32 = vadd.f32 %v5255_v28, %v1634_v34 }
 0x2c3   : > { %v2575_v41 = vadd.f32 %v2567_v61, %v2559_v24  ;;  %v2568_v9 = vmul.f32 %v2548_v40, %v2548_v40  ;;  %v2551_v42 = vadd.f32 %v2533_v19, %v1681_v53  ;;  %v2535_v48 = vadd.f32 %v2534_v38, %v2481_v36  ;;  %v2483_v37 = vpop.f32.mrf.mxu0  ;;  %v4067_v19 = vld [vmem:[#allocation10 + $0x28] sm:$0xff]  }
 0x2c4   : > { %v2536_v21 = vpop.f32.mrf.mxu1 }
 0x2c5   : > { %v5063_v49 = vpack.c.bf16 %v2575_v41, %v2573_v13  ;;  %v2576_v27 = vadd.f32 %v2568_v9, %v2560_v8  ;;  %v2569_v1 = vmul.f32 %v2551_v42, %v2551_v42  ;;  %v2552_v52 = vadd.f32 %v2535_v48, %v1683_v23  ;;  %v2485_v26 = vpop.f32.mrf.mxu0  ;;  %v4068_v8 = vld [vmem:[#allocation10 + $0x60] sm:$0xff]   ;;  %v4070_v9 = vld [vmem:[#allocation10 + $0x58] sm:$0xff]  }
 0x2c6   : > { %v2537_v58 = vadd.f32 %v2536_v21, %v2483_v37  ;;  %v2538_v39 = vpop.f32.mrf.mxu1  ;;  %v2564_v23 = vmul.f32 %v2554_v10, %v2554_v10  ;;  %v4071_v48 = vld [vmem:[#allocation10 + $0x18] sm:$0xff]  }
 0x2c7   : > { %v2585_v5 = vunpack.c.l.bf16 %v5063_v49  ;;  %v2587_v14 = vunpack.c.h.bf16 %v5063_v49  ;;  %v5068_v29 = vpack.c.bf16 %v2576_v27, %v2574_v2  ;;  %v2577_v44 = vadd.f32 %v2569_v1, %v2561_v3  ;;  %v4076_v3 = vld [vmem:[#allocation10 + $0x40] sm:$0xff]  }
 0x2c8   : > { %v2570_v57 = vmul.f32 %v2552_v52, %v2552_v52  ;;  %v2555_v17 = vadd.f32 %v2537_v58, %v1685_v46  ;;  %v2539_v53 = vadd.f32 %v2538_v39, %v2485_v26  ;;  %v4075_v46 = vld [vmem:[#allocation10 + $0x8] sm:$0xff]  }
 0x2c9   : > { %v2593_v18 = vsub.f32 %v2573_v13, %v2585_v5  ;;  %v2595_v22 = vsub.f32 %v2575_v41, %v2587_v14  ;;  %2846 = vmatprep.mubr.bf16.mxu1 %v5068_v29  ;;  %v2586_v55 = vunpack.c.l.bf16 %v5068_v29  ;;  %v2588_v11 = vunpack.c.h.bf16 %v5068_v29 }
 0x2ca   : > { %v2578_v59 = vadd.f32 %v2570_v57, %v2562_v51  ;;  %v2571_v45 = vmul.f32 %v2555_v17, %v2555_v17  ;;  %v2556_v63 = vadd.f32 %v2539_v53, %v1687_v32  ;;  %2847 = vmatmul.mubr.bf16.vlgmr.msra.gmra.mxu1 %v5063_v49 }
 0x2cb   : > { %v2601_v33 = vpack.c.bf16 %v2595_v22, %v2593_v18  ;;  %3559 = vmatpush3.bf16.msra.mxu1 %v4063_v56  ;;  %v2594_v0 = vsub.f32 %v2574_v2, %v2586_v55  ;;  %v2596_v7 = vsub.f32 %v2576_v27, %v2588_v11 }
 0x2cc   : > { %v2579_v13 = vadd.f32 %v2571_v45, %v2563_v12  ;;  %v2572_v24 = vmul.f32 %v2556_v63, %v2556_v63  ;;  %3552 = vmatprep.subr.bf16.mxu1 %v4064_v54 }
 0x2cd   : > { %v2602_v30 = vpack.c.bf16 %v2596_v7, %v2594_v0 }
 0x2ce   : > { %v2583_v35 = vpack.c.bf16 %v2579_v13, %v2577_v44  ;;  %v2580_v61 = vadd.f32 %v2572_v24, %v2564_v23 }
 0x2cf   : > { %3560 = vmatpush3.bf16.msra.mxu1 %v4065_v15  ;;  %2797 = vmatprep.mubr.bf16.mxu0 %v2602_v30 }
 0x2d0   : > { %v2584_v40 = vpack.c.bf16 %v2580_v61, %v2578_v59  ;;  %2798 = vmatmul.mubr.bf16.vlgmr.msra.gmra.mxu0 %v2601_v33  ;;  %3553 = vmatprep.subr.bf16.mxu1 %v4066_v25  ;;  %v2589_v31 = vunpack.c.l.bf16 %v2583_v35  ;;  %v2591_v34 = vunpack.c.h.bf16 %v2583_v35 }
 0x2d1   : > { %3524 = vmatpush3.bf16.msra.mxu0 %v4063_v56 }
 0x2d2   : > { %2854 = vmatprep.mubr.bf16.mxu1 %v2584_v40  ;;  %3525 = vmatprep.subr.bf16.mxu0 %v4064_v54  ;;  %v2590_v2 = vunpack.c.l.bf16 %v2584_v40  ;;  %v2592_v43 = vunpack.c.h.bf16 %v2584_v40  ;;  %v2597_v60 = vsub.f32 %v2577_v44, %v2589_v31  ;;  %v2599_v4 = vsub.f32 %v2579_v13, %v2591_v34 }
 0x2d3   : > { %2855 = vmatmul.mubr.bf16.gmra.mxu1 %v2583_v35 }
 0x2d4   : > { %3561 = vmatpush3.bf16.msra.mxu1 %v4067_v19  ;;  %2999 = vmatprep.mubr.bf16.mxu1 %v2584_v40  ;;  %v2598_v36 = vsub.f32 %v2578_v59, %v2590_v2  ;;  %v2600_v38 = vsub.f32 %v2580_v61, %v2592_v43  ;;  %v2603_v41 = vpack.c.bf16 %v2599_v4, %v2597_v60 }
 0x2d5   : > { %3526 = vmatpush3.bf16.msra.mxu0 %v4065_v15  ;;  %3554 = vmatprep.subr.bf16.mxu1 %v4068_v8 }
 0x2d6   : > { %v2604_v42 = vpack.c.bf16 %v2600_v38, %v2598_v36  ;;  %3527 = vmatprep.subr.bf16.mxu0 %v4066_v25 }
 0x2d8   : > { %3562 = vmatpush3.bf16.msra.mxu1 %v4069_v47  ;;  %2805 = vmatprep.mubr.bf16.mxu0 %v2604_v42 }
 0x2d9   : > { %2806 = vmatmul.mubr.bf16.gmra.mxu0 %v2603_v41  ;;  %3555 = vmatprep.subr.bf16.mxu1 %v4070_v9 }
 0x2da   : > { %3528 = vmatpush3.bf16.msra.mxu0 %v4067_v19  ;;  %2991 = vmatprep.mubr.bf16.mxu0 %v5068_v29 }
 0x2db   : > { %3529 = vmatprep.subr.bf16.mxu0 %v4068_v8 }
 0x2dc   : > { %3563 = vmatpush3.bf16.msra.mxu1 %v4071_v48 }
 0x2dd   : > { %3556 = vmatprep.subr.bf16.mxu1 %v4072_v62 }
 0x2de   : > { %3530 = vmatpush3.bf16.msra.mxu0 %v4069_v47 }
 0x2df   : > { %3531 = vmatprep.subr.bf16.mxu0 %v4070_v9 }
 0x2e0   : > { %3564 = vmatpush3.bf16.msra.mxu1 %v4073_v50 }
 0x2e1   : > { %3557 = vmatprep.subr.bf16.mxu1 %v4074_v20 }
 0x2e2   : > { %3532 = vmatpush3.bf16.msra.mxu0 %v4071_v48 }
 0x2e3   : > { %3533 = vmatprep.subr.bf16.mxu0 %v4072_v62 }
 0x2e4   : > { %3565 = vmatpush3.bf16.msra.mxu1 %v4075_v46 }
 0x2e5   : > { %3558 = vmatprep.subr.bf16.mxu1 %v4076_v3 }
 0x2e6   : > { %3534 = vmatpush3.bf16.msra.mxu0 %v4073_v50 }
 0x2e7   : > { %3535 = vmatprep.subr.bf16.mxu0 %v4074_v20 }
 0x2e8   : > { %3566 = vmatpush3.bf16.msra.mxu1 %v4077_v16 }
 0x2ea   : > { %3536 = vmatpush3.bf16.msra.mxu0 %v4075_v46 }
 0x2eb   : > { %3000 = vmatmul.mubr.bf16.vlgmr.msra.gmra.mxu1 %v2583_v35  ;;  %3537 = vmatprep.subr.bf16.mxu0 %v4076_v3 }
 0x2ee   : > { %3538 = vmatpush3.bf16.msra.mxu0 %v4077_v16 }
 0x2f1   : > { %2992 = vmatmul.mubr.bf16.vlgmr.msra.gmra.mxu0 %v5063_v49 }
 0x38a   : > { %v3511_v37 = vpop.f32.mrf.mxu1 }
 0x38c   : > { %v3512_v27 = vpop.f32.mrf.mxu1 }
 0x38d   : > { %v3513_v12 = vadd.f32 %v3512_v27, %v3511_v37 }
 0x38e   : > { %v3514_v52 = vpop.f32.mrf.mxu1 }
 0x390   : > { %v3483_v21 = vpop.f32.mrf.mxu0  ;;  %v3515_v32 = vpop.f32.mrf.mxu1 }
 0x391   : > { %v3516_v30 = vadd.f32 %v3515_v32, %v3514_v52 }
 0x392   : > { %v3484_v1 = vpop.f32.mrf.mxu0 }
 0x393   : > { %v3517_v6 = vpop.f32.mrf.mxu1  ;;  %v3485_v18 = vadd.f32 %v3484_v1, %v3483_v21 }
 0x394   : > { %v3486_v28 = vpop.f32.mrf.mxu0 }
 0x395   : > { %v3518_v26 = vpop.f32.mrf.mxu1  ;;  %v2849_v0 = vadd.f32 %v3513_v12, %v3485_v18 }
 0x396   : > { %v3487_v51 = vpop.f32.mrf.mxu0  ;;  %v3519_v57 = vadd.f32 %v3518_v26, %v3517_v6 }
 0x397   : > { %v3520_v5 = vpop.f32.mrf.mxu1  ;;  %v3488_v23 = vadd.f32 %v3487_v51, %v3486_v28 }
 0x399   : > { %v3489_v58 = vpop.f32.mrf.mxu0  ;;  %v3521_v29 = vpop.f32.mrf.mxu1  ;;  %v2852_v19 = vadd.f32 %v3516_v30, %v3488_v23 }
 0x39a   : > { %v3522_v55 = vadd.f32 %v3521_v29, %v3520_v5 }
 0x39b   : > { %v3490_v39 = vpop.f32.mrf.mxu0 }
 0x39c   : > { %v3491_v44 = vadd.f32 %v3490_v39, %v3489_v58 }
 0x39d   : > { %v3492_v14 = vpop.f32.mrf.mxu0 }
 0x39e   : > { %v2857_v17 = vadd.f32 %v3519_v57, %v3491_v44 }
 0x39f   : > { %v3493_v56 = vpop.f32.mrf.mxu0 }
 0x3a0   : > { %v3494_v53 = vadd.f32 %v3493_v56, %v3492_v14 }
 0x3a2   : > { %v2860_v63 = vadd.f32 %v3522_v55, %v3494_v53 }
 0x3ab   : > { %v3545_v10 = vpop.f32.mrf.mxu1 }
 0x3ad   : > { %v3546_v49 = vpop.f32.mrf.mxu1 }
 0x3ae   : > { %v3547_v54 = vadd.f32 %v3546_v49, %v3545_v10 }
 0x3af   : > { %v3548_v22 = vpop.f32.mrf.mxu1 }
 0x3b0   : > { %v3010_v11 = vadd.f32 %v3547_v54, %v2857_v17 }
 0x3b1   : > { %v3539_v59 = vpop.f32.mrf.mxu0  ;;  %v3549_v45 = vpop.f32.mrf.mxu1 }
 0x3b2   : > { %v3014_v33 = vmax.f32 %v3010_v11, 1.1920929e-07  ;;  %v3550_v15 = vadd.f32 %v3549_v45, %v3548_v22 }
 0x3b3   : > { %v3540_v7 = vpop.f32.mrf.mxu0 }
 0x3b4   : > { %4078 = vlog2.f32 %v3014_v33  ;;  %v3011_v13 = vadd.f32 %v3550_v15, %v2860_v63  ;;  %v3541_v24 = vadd.f32 %v3540_v7, %v3539_v59 }
 0x3b5   : > { %v3542_v25 = vpop.f32.mrf.mxu0 }
 0x3b6   : > { %v3015_v35 = vmax.f32 %v3011_v13, 1.1920929e-07  ;;  %v3008_v61 = vadd.f32 %v3541_v24, %v2849_v0 }
 0x3b7   : > { %v3543_v40 = vpop.f32.mrf.mxu0 }
 0x3b8   : > { %4080 = vlog2.f32 %v3015_v35  ;;  %v3012_v31 = vmax.f32 %v3008_v61, 1.1920929e-07  ;;  %v3544_v34 = vadd.f32 %v3543_v40, %v3542_v25 }
 0x3ba   : > { %4082 = vlog2.f32 %v3012_v31  ;;  %v3009_v8 = vadd.f32 %v3544_v34, %v2852_v19 }
 0x3bc   : > { %v3013_v2 = vmax.f32 %v3009_v8, 1.1920929e-07 }
 0x3be   : > { %4084 = vlog2.f32 %v3013_v2 }
 0x3c1   : > { %v4079_v43 = vpop.eup %4078 }
 0x3c2   : > { %v3021_v60 = vmul.f32 0.6931472, %v4079_v43 }
 0x3c4   : > { %3026 = vst [vmem:[%s301_s26 + $0x10] sm:$0xff] %v3021_v60 }
 0x3c5   : > { %v4081_v4 = vpop.eup %4080 }
 0x3c6   : > { %v3023_v47 = vmul.f32 0.6931472, %v4081_v4 }
 0x3c7   : > { %v4083_v36 = vpop.eup %4082 }
 0x3c8   : > { %3027 = vst [vmem:[%s301_s26 + $0x18] sm:$0xff] %v3023_v47  ;;  %v3017_v38 = vmul.f32 0.6931472, %v4083_v36 }
 0x3ca   : > { %3024 = vst [vmem:[%s301_s26] sm:$0xff] %v3017_v38 }
 0x3cb   : > { %v4085_v41 = vpop.eup %4084 }
 0x3cc   : > { %v3019_v9 = vmul.f32 0.6931472, %v4085_v41 }
 0x3ce   : > { %3025 = vst [vmem:[%s301_s26 + $0x8] sm:$0xff] %v3019_v9 }
 0x3cf   : > { %4287 = shalt.err (!%p4284_p3)
}
 0x3d0   : > { %s4288_s12 = scalar_lea.hbm %s5083_s17, 512  ;;  %s4292_s13 = scalar_lea.hbm %s5131_s5, 1024 }
 0x3d1   : > { %p4289_p5 = scmp.ne.s32.totalorder %s5083_s17, %s4288_s12  ;;  %p4293_p8 = scmp.lt.s32.totalorder %s5083_s17, %s5131_s5 }
 0x3d2   : > { %p4294_p13 = scmp.lt.s32.totalorder %s4292_s13, %s4288_s12 }
 0x3d3   : > { %p4290_p4 = pnand %p4289_p5, %p5256_p2 }
 0x3d4   : > { %p4295_p11 = por %p4294_p13, %p4293_p8 }
 0x3d5   : > { %p4291_p6 = pneg %p4290_p4 }
 0x3d7   : > { %p4296_p1 = pnand %p4295_p11, %p4291_p6 }
 0x3d9   : > { %4299 = shalt.err (!%p4296_p1)
}
 0x3da   : > { %s4360_s6 = smov 128   ;;  %s4361_s7 = smov 8  }
 0x3db   : > { %3585 = dma.vmem_to_hbm [thread:$0]  (%p5256_p2), %s5078_s28, 512, %s5083_s17, %s3029_s14, %s4360_s6, %s4360_s6, %s4361_s7  }
 0x3dc PF: > { %s3057_s10 = sand.u32 1, %s4334_s18   ;;  %p5257_p12 = scmp.ne.s32.totalorder %s5166_s25, 0 }
 0x3dd   : > { %p5258_p7 = scmp.ge.s32.totalorder %s4346_s21, 2  ;;  %s3058_s27 = scalar_lea.sflag [#allocation4], %s3057_s10 }
 0x3df   : > { %p3605_p9 = pnand %p5258_p7, %p5257_p12 }
 0x3e1   : > { %p3606_p0 = pneg %p3605_p9 }
 0x3e3   : > { %4329 = dma.done.wait (%p3606_p0), %s3058_s27, 512  }
 0x3e4   : > { %4331 = vsyncadd (%p3606_p0), %s3058_s27, 4294966784  ;;  %p20_p10 = scmp.ge.s32.totalorder %s4492_s8, 4   ;;  %s5259_s18 = smov %s4338_s19 }
 0x3e5   : > { %s5260_s19 = smov %s4342_s20  ;;  %s5261_s20 = smov %s4501_s15 }
 0x3e6   : > { %s5262_s21 = smov %s4492_s8  ;;  %22 = sbr.rel (!%p20_p10) target bundleno = 7 (0x7), region = 101 }
 0x3eb   :  { %3063 = vsyncpa [#allocation3], 1 }
 0x3ec   :  { %3065 = vsyncpa [#allocation3 + $0x1], 1 }
 0x3ed   :  { %3066 = vsyncpa [#allocation6], 1 }
 0x3ee   :  { %3067 = vsyncpa [#allocation9], 1 }
 0x3ef   :  { %3068 = vsyncpa [#allocation4], 1 }
 0x3f0   :  { %3070 = vsyncpa [#allocation4 + $0x1], 1 }

</bundles_post_ra>
